<compile_context>
chip_gen: v7x
topology: tpu7x:2x2x1
jax: 0.10.0
libtpu: 0.0.40
codegen_flags: <defaults>
</compile_context>

<pallas_src>
import functools

import jax
import jax.numpy as jnp
from jax import lax
from jax.experimental import pallas as pl
from jax.experimental.pallas import tpu as pltpu


# ---------------------------------------------------------------------------
# Pallas kernel: full bidirectional pass (right then left), everything in VMEM.
# ---------------------------------------------------------------------------
def lstm_bi_kernel(x2d_ref, ac0_ref, wx_ref, wh_ref, b_ref,
                   out_ref, states_ref, *, B, T, H):
    # Recurrent weight stays resident (in vregs/VMEM) across both passes.
    wh = wh_ref[...]                                           # (H, 4H)

    # Non-recurrent input projection for ALL timesteps in one fused matmul,
    # with the (fused) bias folded in once:  (B*T, E) @ (E, 4H) + (1, 4H).
    xp = jnp.dot(x2d_ref[...], wx_ref[...],
                 preferred_element_type=jnp.float32) + b_ref[...]
    xp = xp.reshape(B, T, 4 * H)                               # (B, T, 4H)

    def cell(z, c):
        # z: (B, 4H) pre-activations, gate order [cand | update | forget | output].
        cand = jnp.tanh(z[:, 0:H])
        gates = jax.nn.sigmoid(z[:, H:4 * H])                  # one EUP pass for u/f/o
        g_u = gates[:, 0:H]
        g_f = gates[:, H:2 * H]
        g_o = gates[:, 2 * H:3 * H]
        c1 = g_u * cand + g_f * c
        a1 = g_o * jnp.tanh(c1)
        return a1, c1

    # Packed initial state: ac0[0] = a0, ac0[1] = c0.
    a = ac0_ref[0]                                             # (B, H)
    c = ac0_ref[1]                                             # (B, H)

    # ---- right pass (no stores inside the recurrence) -----------------------
    right = []
    for t in range(T):                                         # fully unrolled (T static)
        z = xp[:, t, :] + jnp.dot(a, wh, preferred_element_type=jnp.float32)
        a, c = cell(z, c)
        right.append(a)
    a_r, c_r = a, c

    # ---- left pass: flipped time order, seeded with the right pass's state --
    # Matches PyTorch: aleft[:, t, :] comes from processing x[:, T-1-t, :] and is
    # concatenated WITHOUT flipping back.
    left = []
    for t in range(T):
        z = xp[:, T - 1 - t, :] + jnp.dot(a, wh, preferred_element_type=jnp.float32)
        a, c = cell(z, c)
        left.append(a)
    a_l, c_l = a, c

    # ---- single bulk stores (lane-dense, off the recurrence critical path) --
    right = jnp.stack(right, axis=1)                           # (B, T, H)
    left = jnp.stack(left, axis=1)                             # (B, T, H)
    out_ref[...] = jnp.concatenate([right, left], axis=2)      # (B, T, 2H), one store

    # Packed final states: [a_r | c_r | a_l | c_l] -> one output buffer / DMA.
    states_ref[...] = jnp.stack([a_r, c_r, a_l, c_l], axis=0)  # (4, B, H)


# ---------------------------------------------------------------------------
# Wrapper: pack/fuse weights & state, call the kernel once, unpack outputs.
# ---------------------------------------------------------------------------
def lstm_singlebi_forward(x, a0, c0, params):
    """x: (B, T, E); a0, c0: (B, H). Returns (out (B,T,2H), (a_r, c_r, a_l, c_l))."""
    B, T, E = x.shape
    H = a0.shape[1]

    # torch does cat([a, x], dim=1) @ w_g.T, so w_g[:, :H] acts on a and w_g[:, H:]
    # acts on x. Fuse all four gates along the output (lane) axis: [c | u | f | o].
    gate_w = ('w_c', 'w_u', 'w_f', 'w_o')
    w_h = jnp.concatenate([params[g][:, :H].T for g in gate_w], axis=1)   # (H, 4H)
    w_x = jnp.concatenate([params[g][:, H:].T for g in gate_w], axis=1)   # (E, 4H)
    bias = jnp.concatenate([params['b_c'], params['b_u'],
                            params['b_f'], params['b_o']], axis=1)        # (1, 4H)

    x2d = x.reshape(B * T, E)          # metadata-only reshape; keeps kernel input 2-D
    ac0 = jnp.stack([a0, c0], axis=0)  # (2, B, H): one input DMA instead of two

    vmem = pl.BlockSpec(memory_space=pltpu.MemorySpace.VMEM)
    kernel = functools.partial(lstm_bi_kernel, B=B, T=T, H=H)
    out, states = pl.pallas_call(
        kernel,
        out_shape=(jax.ShapeDtypeStruct((B, T, 2 * H), jnp.float32),
                   jax.ShapeDtypeStruct((4, B, H), jnp.float32)),
        in_specs=[vmem] * 5,
        out_specs=(vmem, vmem),
    )(x2d, ac0, w_x, w_h, bias)

    return out, (states[0], states[1], states[2], states[3])


# ---------------------------------------------------------------------------
# Deterministic parameter init (nn.init.xavier_uniform_ semantics).
# ---------------------------------------------------------------------------
def xavier_uniform(key, shape):
    fan_out, fan_in = shape
    bound = (6.0 / (fan_in + fan_out)) ** 0.5
    return jax.random.uniform(key, shape, jnp.float32, -bound, bound)


def init_params(key, out_size, embedding_size):
    in_size = embedding_size + out_size
    keys = jax.random.split(key, 8)
    return {
        'w_c': xavier_uniform(keys[0], (out_size, in_size)),
        'w_u': xavier_uniform(keys[1], (out_size, in_size)),
        'w_f': xavier_uniform(keys[2], (out_size, in_size)),
        'w_o': xavier_uniform(keys[3], (out_size, in_size)),
        'b_c': xavier_uniform(keys[4], (1, out_size)),
        'b_u': xavier_uniform(keys[5], (1, out_size)),
        'b_f': xavier_uniform(keys[6], (1, out_size)),
        'b_o': xavier_uniform(keys[7], (1, out_size)),
    }


# ---------------------------------------------------------------------------
# Pure-JAX reference (mirrors the PyTorch loop) for the correctness check.
# ---------------------------------------------------------------------------
def ref_single(x, a0, c0, p):
    def step(carry, x_t):
        a, c = carry
        cat = jnp.concatenate([a, x_t], axis=1)
        cand = jnp.tanh(cat @ p['w_c'].T + p['b_c'])
        g_u = jax.nn.sigmoid(cat @ p['w_u'].T + p['b_u'])
        g_f = jax.nn.sigmoid(cat @ p['w_f'].T + p['b_f'])
        g_o = jax.nn.sigmoid(cat @ p['w_o'].T + p['b_o'])
        c1 = g_u * cand + g_f * c
        a1 = g_o * jnp.tanh(c1)
        return (a1, c1), a1
    (a_f, c_f), ys = lax.scan(step, (a0, c0), jnp.transpose(x, (1, 0, 2)))
    return jnp.transpose(ys, (1, 0, 2)), a_f, c_f


def ref_bi(x, a0, c0, p):
    aright, a_r, c_r = ref_single(x, a0, c0, p)
    aleft, a_l, c_l = ref_single(jnp.flip(x, axis=1), a_r, c_r, p)
    return jnp.concatenate([aright, aleft], axis=2), (a_r, c_r, a_l, c_l)


if __name__ == "__main__":
    B, T, E, H = 2, 8, 32, 32          # batch, seq len, embedding_size, out_size

    key = jax.random.PRNGKey(0)
    k_p, k_x, k_a, k_c = jax.random.split(key, 4)

    params = init_params(k_p, out_size=H, embedding_size=E)
    x = jax.random.normal(k_x, (B, T, E), dtype=jnp.float32)
    a0 = jax.random.normal(k_a, (B, H), dtype=jnp.float32)
    c0 = jax.random.normal(k_c, (B, H), dtype=jnp.float32)

    out, (a_r, c_r, a_l, c_l) = jax.jit(lstm_singlebi_forward)(x, a0, c0, params)
    jax.block_until_ready((out, a_r, c_r, a_l, c_l))

    # Correctness check against the pure-JAX mirror of the PyTorch forward.
    out_ref, (ar_ref, cr_ref, al_ref, cl_ref) = ref_bi(x, a0, c0, params)
    assert out.shape == (B, T, 2 * H)
    assert jnp.allclose(out, out_ref, atol=1e-4)
    assert jnp.allclose(a_r, ar_ref, atol=1e-4)
    assert jnp.allclose(c_r, cr_ref, atol=1e-4)
    assert jnp.allclose(a_l, al_ref, atol=1e-4)
    assert jnp.allclose(c_l, cl_ref, atol=1e-4)

    print("KERNEL_OK")
</pallas_src>

<mosaic_0001>
module attributes {stable_mosaic.version = 11 : i64} {
  func.func @lstm_bi_kernel(%arg0: memref<16x32xf32, #tpu.memory_space<vmem>>, %arg1: memref<2x2x32xf32, #tpu.memory_space<vmem>>, %arg2: memref<32x128xf32, #tpu.memory_space<vmem>>, %arg3: memref<32x128xf32, #tpu.memory_space<vmem>>, %arg4: memref<1x128xf32, #tpu.memory_space<vmem>>, %arg5: memref<2x8x64xf32, #tpu.memory_space<vmem>>, %arg6: memref<4x2x32xf32, #tpu.memory_space<vmem>>) attributes {dimension_semantics = [], scalar_prefetch = 0 : i64, scratch_operands = 0 : i64, tpu.core_type = #tpu.core_type<tc>} {
    %c0 = arith.constant 0 : index
    %c0_0 = arith.constant 0 : index
    %0 = vector.load %arg3[%c0, %c0_0] : memref<32x128xf32, #tpu.memory_space<vmem>>, vector<32x128xf32>
    %c0_1 = arith.constant 0 : index
    %c0_2 = arith.constant 0 : index
    %1 = vector.load %arg0[%c0_1, %c0_2] : memref<16x32xf32, #tpu.memory_space<vmem>>, vector<16x32xf32>
    %c0_3 = arith.constant 0 : index
    %c0_4 = arith.constant 0 : index
    %2 = vector.load %arg2[%c0_3, %c0_4] : memref<32x128xf32, #tpu.memory_space<vmem>>, vector<32x128xf32>
    %cst = arith.constant dense<0.000000e+00> : vector<16x128xf32>
    %3 = tpu.matmul %1, %2, %cst {dimension_numbers = #tpu.dot_dimension_numbers<[1], [0], [0], [1], [0, 0, 1, 1], [], []>} : vector<16x32xf32>, vector<32x128xf32>, vector<16x128xf32> -> vector<16x128xf32>
    %c0_5 = arith.constant 0 : index
    %c0_6 = arith.constant 0 : index
    %4 = vector.load %arg4[%c0_5, %c0_6] : memref<1x128xf32, #tpu.memory_space<vmem>>, vector<1x128xf32>
    %5 = vector.broadcast %4 : vector<1x128xf32> to vector<16x128xf32>
    %6 = arith.addf %3, %5 : vector<16x128xf32>
    %7 = vector.shape_cast %6 : vector<16x128xf32> to vector<2x8x128xf32>
    %c0_7 = arith.constant 0 : index
    %c0_8 = arith.constant 0 : index
    %c0_9 = arith.constant 0 : index
    %8 = vector.load %arg1[%c0_7, %c0_8, %c0_9] : memref<2x2x32xf32, #tpu.memory_space<vmem>>, vector<1x2x32xf32>
    %9 = vector.shape_cast %8 : vector<1x2x32xf32> to vector<2x32xf32>
    %c1 = arith.constant 1 : index
    %c0_10 = arith.constant 0 : index
    %c0_11 = arith.constant 0 : index
    %10 = vector.load %arg1[%c1, %c0_10, %c0_11] : memref<2x2x32xf32, #tpu.memory_space<vmem>>, vector<1x2x32xf32>
    %11 = vector.shape_cast %10 : vector<1x2x32xf32> to vector<2x32xf32>
    %12 = vector.extract_strided_slice %7 {offsets = [0, 0, 0], sizes = [2, 1, 128], strides = [1, 1, 1]} : vector<2x8x128xf32> to vector<2x1x128xf32>
    %13 = vector.shape_cast %12 : vector<2x1x128xf32> to vector<2x128xf32>
    %cst_12 = arith.constant dense<0.000000e+00> : vector<2x128xf32>
    %14 = tpu.matmul %9, %0, %cst_12 {dimension_numbers = #tpu.dot_dimension_numbers<[1], [0], [0], [1], [0, 0, 1, 1], [], []>} : vector<2x32xf32>, vector<32x128xf32>, vector<2x128xf32> -> vector<2x128xf32>
    %15 = arith.addf %13, %14 : vector<2x128xf32>
    %16 = vector.extract_strided_slice %15 {offsets = [0, 0], sizes = [2, 32], strides = [1, 1]} : vector<2x128xf32> to vector<2x32xf32>
    %17 = math.tanh %16 : vector<2x32xf32>
    %18 = vector.extract_strided_slice %15 {offsets = [0, 32], sizes = [2, 96], strides = [1, 1]} : vector<2x128xf32> to vector<2x96xf32>
    %19 = arith.negf %18 : vector<2x96xf32>
    %20 = math.exp %19 : vector<2x96xf32>
    %cst_13 = arith.constant 1.000000e+00 : f32
    %21 = vector.broadcast %cst_13 : f32 to vector<2x96xf32>
    %22 = arith.addf %21, %20 : vector<2x96xf32>
    %23 = arith.divf %21, %22 : vector<2x96xf32>
    %24 = vector.extract_strided_slice %23 {offsets = [0, 0], sizes = [2, 32], strides = [1, 1]} : vector<2x96xf32> to vector<2x32xf32>
    %25 = vector.extract_strided_slice %23 {offsets = [0, 32], sizes = [2, 32], strides = [1, 1]} : vector<2x96xf32> to vector<2x32xf32>
    %26 = vector.extract_strided_slice %23 {offsets = [0, 64], sizes = [2, 32], strides = [1, 1]} : vector<2x96xf32> to vector<2x32xf32>
    %27 = arith.mulf %24, %17 : vector<2x32xf32>
    %28 = arith.mulf %25, %11 : vector<2x32xf32>
    %29 = arith.addf %27, %28 : vector<2x32xf32>
    %30 = math.tanh %29 : vector<2x32xf32>
    %31 = arith.mulf %26, %30 : vector<2x32xf32>
    %32 = vector.extract_strided_slice %7 {offsets = [0, 1, 0], sizes = [2, 1, 128], strides = [1, 1, 1]} : vector<2x8x128xf32> to vector<2x1x128xf32>
    %33 = vector.shape_cast %32 : vector<2x1x128xf32> to vector<2x128xf32>
    %cst_14 = arith.constant dense<0.000000e+00> : vector<2x128xf32>
    %34 = tpu.matmul %31, %0, %cst_14 {dimension_numbers = #tpu.dot_dimension_numbers<[1], [0], [0], [1], [0, 0, 1, 1], [], []>} : vector<2x32xf32>, vector<32x128xf32>, vector<2x128xf32> -> vector<2x128xf32>
    %35 = arith.addf %33, %34 : vector<2x128xf32>
    %36 = vector.extract_strided_slice %35 {offsets = [0, 0], sizes = [2, 32], strides = [1, 1]} : vector<2x128xf32> to vector<2x32xf32>
    %37 = math.tanh %36 : vector<2x32xf32>
    %38 = vector.extract_strided_slice %35 {offsets = [0, 32], sizes = [2, 96], strides = [1, 1]} : vector<2x128xf32> to vector<2x96xf32>
    %39 = arith.negf %38 : vector<2x96xf32>
    %40 = math.exp %39 : vector<2x96xf32>
    %cst_15 = arith.constant 1.000000e+00 : f32
    %41 = vector.broadcast %cst_15 : f32 to vector<2x96xf32>
    %42 = arith.addf %41, %40 : vector<2x96xf32>
    %43 = arith.divf %41, %42 : vector<2x96xf32>
    %44 = vector.extract_strided_slice %43 {offsets = [0, 0], sizes = [2, 32], strides = [1, 1]} : vector<2x96xf32> to vector<2x32xf32>
    %45 = vector.extract_strided_slice %43 {offsets = [0, 32], sizes = [2, 32], strides = [1, 1]} : vector<2x96xf32> to vector<2x32xf32>
    %46 = vector.extract_strided_slice %43 {offsets = [0, 64], sizes = [2, 32], strides = [1, 1]} : vector<2x96xf32> to vector<2x32xf32>
    %47 = arith.mulf %44, %37 : vector<2x32xf32>
    %48 = arith.mulf %45, %29 : vector<2x32xf32>
    %49 = arith.addf %47, %48 : vector<2x32xf32>
    %50 = math.tanh %49 : vector<2x32xf32>
    %51 = arith.mulf %46, %50 : vector<2x32xf32>
    %52 = vector.extract_strided_slice %7 {offsets = [0, 2, 0], sizes = [2, 1, 128], strides = [1, 1, 1]} : vector<2x8x128xf32> to vector<2x1x128xf32>
    %53 = vector.shape_cast %52 : vector<2x1x128xf32> to vector<2x128xf32>
    %cst_16 = arith.constant dense<0.000000e+00> : vector<2x128xf32>
    %54 = tpu.matmul %51, %0, %cst_16 {dimension_numbers = #tpu.dot_dimension_numbers<[1], [0], [0], [1], [0, 0, 1, 1], [], []>} : vector<2x32xf32>, vector<32x128xf32>, vector<2x128xf32> -> vector<2x128xf32>
    %55 = arith.addf %53, %54 : vector<2x128xf32>
    %56 = vector.extract_strided_slice %55 {offsets = [0, 0], sizes = [2, 32], strides = [1, 1]} : vector<2x128xf32> to vector<2x32xf32>
    %57 = math.tanh %56 : vector<2x32xf32>
    %58 = vector.extract_strided_slice %55 {offsets = [0, 32], sizes = [2, 96], strides = [1, 1]} : vector<2x128xf32> to vector<2x96xf32>
    %59 = arith.negf %58 : vector<2x96xf32>
    %60 = math.exp %59 : vector<2x96xf32>
    %cst_17 = arith.constant 1.000000e+00 : f32
    %61 = vector.broadcast %cst_17 : f32 to vector<2x96xf32>
    %62 = arith.addf %61, %60 : vector<2x96xf32>
    %63 = arith.divf %61, %62 : vector<2x96xf32>
    %64 = vector.extract_strided_slice %63 {offsets = [0, 0], sizes = [2, 32], strides = [1, 1]} : vector<2x96xf32> to vector<2x32xf32>
    %65 = vector.extract_strided_slice %63 {offsets = [0, 32], sizes = [2, 32], strides = [1, 1]} : vector<2x96xf32> to vector<2x32xf32>
    %66 = vector.extract_strided_slice %63 {offsets = [0, 64], sizes = [2, 32], strides = [1, 1]} : vector<2x96xf32> to vector<2x32xf32>
    %67 = arith.mulf %64, %57 : vector<2x32xf32>
    %68 = arith.mulf %65, %49 : vector<2x32xf32>
    %69 = arith.addf %67, %68 : vector<2x32xf32>
    %70 = math.tanh %69 : vector<2x32xf32>
    %71 = arith.mulf %66, %70 : vector<2x32xf32>
    %72 = vector.extract_strided_slice %7 {offsets = [0, 3, 0], sizes = [2, 1, 128], strides = [1, 1, 1]} : vector<2x8x128xf32> to vector<2x1x128xf32>
    %73 = vector.shape_cast %72 : vector<2x1x128xf32> to vector<2x128xf32>
    %cst_18 = arith.constant dense<0.000000e+00> : vector<2x128xf32>
    %74 = tpu.matmul %71, %0, %cst_18 {dimension_numbers = #tpu.dot_dimension_numbers<[1], [0], [0], [1], [0, 0, 1, 1], [], []>} : vector<2x32xf32>, vector<32x128xf32>, vector<2x128xf32> -> vector<2x128xf32>
    %75 = arith.addf %73, %74 : vector<2x128xf32>
    %76 = vector.extract_strided_slice %75 {offsets = [0, 0], sizes = [2, 32], strides = [1, 1]} : vector<2x128xf32> to vector<2x32xf32>
    %77 = math.tanh %76 : vector<2x32xf32>
    %78 = vector.extract_strided_slice %75 {offsets = [0, 32], sizes = [2, 96], strides = [1, 1]} : vector<2x128xf32> to vector<2x96xf32>
    %79 = arith.negf %78 : vector<2x96xf32>
    %80 = math.exp %79 : vector<2x96xf32>
    %cst_19 = arith.constant 1.000000e+00 : f32
    %81 = vector.broadcast %cst_19 : f32 to vector<2x96xf32>
    %82 = arith.addf %81, %80 : vector<2x96xf32>
    %83 = arith.divf %81, %82 : vector<2x96xf32>
    %84 = vector.extract_strided_slice %83 {offsets = [0, 0], sizes = [2, 32], strides = [1, 1]} : vector<2x96xf32> to vector<2x32xf32>
    %85 = vector.extract_strided_slice %83 {offsets = [0, 32], sizes = [2, 32], strides = [1, 1]} : vector<2x96xf32> to vector<2x32xf32>
    %86 = vector.extract_strided_slice %83 {offsets = [0, 64], sizes = [2, 32], strides = [1, 1]} : vector<2x96xf32> to vector<2x32xf32>
    %87 = arith.mulf %84, %77 : vector<2x32xf32>
    %88 = arith.mulf %85, %69 : vector<2x32xf32>
    %89 = arith.addf %87, %88 : vector<2x32xf32>
    %90 = math.tanh %89 : vector<2x32xf32>
    %91 = arith.mulf %86, %90 : vector<2x32xf32>
    %92 = vector.extract_strided_slice %7 {offsets = [0, 4, 0], sizes = [2, 1, 128], strides = [1, 1, 1]} : vector<2x8x128xf32> to vector<2x1x128xf32>
    %93 = vector.shape_cast %92 : vector<2x1x128xf32> to vector<2x128xf32>
    %cst_20 = arith.constant dense<0.000000e+00> : vector<2x128xf32>
    %94 = tpu.matmul %91, %0, %cst_20 {dimension_numbers = #tpu.dot_dimension_numbers<[1], [0], [0], [1], [0, 0, 1, 1], [], []>} : vector<2x32xf32>, vector<32x128xf32>, vector<2x128xf32> -> vector<2x128xf32>
    %95 = arith.addf %93, %94 : vector<2x128xf32>
    %96 = vector.extract_strided_slice %95 {offsets = [0, 0], sizes = [2, 32], strides = [1, 1]} : vector<2x128xf32> to vector<2x32xf32>
    %97 = math.tanh %96 : vector<2x32xf32>
    %98 = vector.extract_strided_slice %95 {offsets = [0, 32], sizes = [2, 96], strides = [1, 1]} : vector<2x128xf32> to vector<2x96xf32>
    %99 = arith.negf %98 : vector<2x96xf32>
    %100 = math.exp %99 : vector<2x96xf32>
    %cst_21 = arith.constant 1.000000e+00 : f32
    %101 = vector.broadcast %cst_21 : f32 to vector<2x96xf32>
    %102 = arith.addf %101, %100 : vector<2x96xf32>
    %103 = arith.divf %101, %102 : vector<2x96xf32>
    %104 = vector.extract_strided_slice %103 {offsets = [0, 0], sizes = [2, 32], strides = [1, 1]} : vector<2x96xf32> to vector<2x32xf32>
    %105 = vector.extract_strided_slice %103 {offsets = [0, 32], sizes = [2, 32], strides = [1, 1]} : vector<2x96xf32> to vector<2x32xf32>
    %106 = vector.extract_strided_slice %103 {offsets = [0, 64], sizes = [2, 32], strides = [1, 1]} : vector<2x96xf32> to vector<2x32xf32>
    %107 = arith.mulf %104, %97 : vector<2x32xf32>
    %108 = arith.mulf %105, %89 : vector<2x32xf32>
    %109 = arith.addf %107, %108 : vector<2x32xf32>
    %110 = math.tanh %109 : vector<2x32xf32>
    %111 = arith.mulf %106, %110 : vector<2x32xf32>
    %112 = vector.extract_strided_slice %7 {offsets = [0, 5, 0], sizes = [2, 1, 128], strides = [1, 1, 1]} : vector<2x8x128xf32> to vector<2x1x128xf32>
    %113 = vector.shape_cast %112 : vector<2x1x128xf32> to vector<2x128xf32>
    %cst_22 = arith.constant dense<0.000000e+00> : vector<2x128xf32>
    %114 = tpu.matmul %111, %0, %cst_22 {dimension_numbers = #tpu.dot_dimension_numbers<[1], [0], [0], [1], [0, 0, 1, 1], [], []>} : vector<2x32xf32>, vector<32x128xf32>, vector<2x128xf32> -> vector<2x128xf32>
    %115 = arith.addf %113, %114 : vector<2x128xf32>
    %116 = vector.extract_strided_slice %115 {offsets = [0, 0], sizes = [2, 32], strides = [1, 1]} : vector<2x128xf32> to vector<2x32xf32>
    %117 = math.tanh %116 : vector<2x32xf32>
    %118 = vector.extract_strided_slice %115 {offsets = [0, 32], sizes = [2, 96], strides = [1, 1]} : vector<2x128xf32> to vector<2x96xf32>
    %119 = arith.negf %118 : vector<2x96xf32>
    %120 = math.exp %119 : vector<2x96xf32>
    %cst_23 = arith.constant 1.000000e+00 : f32
    %121 = vector.broadcast %cst_23 : f32 to vector<2x96xf32>
    %122 = arith.addf %121, %120 : vector<2x96xf32>
    %123 = arith.divf %121, %122 : vector<2x96xf32>
    %124 = vector.extract_strided_slice %123 {offsets = [0, 0], sizes = [2, 32], strides = [1, 1]} : vector<2x96xf32> to vector<2x32xf32>
    %125 = vector.extract_strided_slice %123 {offsets = [0, 32], sizes = [2, 32], strides = [1, 1]} : vector<2x96xf32> to vector<2x32xf32>
    %126 = vector.extract_strided_slice %123 {offsets = [0, 64], sizes = [2, 32], strides = [1, 1]} : vector<2x96xf32> to vector<2x32xf32>
    %127 = arith.mulf %124, %117 : vector<2x32xf32>
    %128 = arith.mulf %125, %109 : vector<2x32xf32>
    %129 = arith.addf %127, %128 : vector<2x32xf32>
    %130 = math.tanh %129 : vector<2x32xf32>
    %131 = arith.mulf %126, %130 : vector<2x32xf32>
    %132 = vector.extract_strided_slice %7 {offsets = [0, 6, 0], sizes = [2, 1, 128], strides = [1, 1, 1]} : vector<2x8x128xf32> to vector<2x1x128xf32>
    %133 = vector.shape_cast %132 : vector<2x1x128xf32> to vector<2x128xf32>
    %cst_24 = arith.constant dense<0.000000e+00> : vector<2x128xf32>
    %134 = tpu.matmul %131, %0, %cst_24 {dimension_numbers = #tpu.dot_dimension_numbers<[1], [0], [0], [1], [0, 0, 1, 1], [], []>} : vector<2x32xf32>, vector<32x128xf32>, vector<2x128xf32> -> vector<2x128xf32>
    %135 = arith.addf %133, %134 : vector<2x128xf32>
    %136 = vector.extract_strided_slice %135 {offsets = [0, 0], sizes = [2, 32], strides = [1, 1]} : vector<2x128xf32> to vector<2x32xf32>
    %137 = math.tanh %136 : vector<2x32xf32>
    %138 = vector.extract_strided_slice %135 {offsets = [0, 32], sizes = [2, 96], strides = [1, 1]} : vector<2x128xf32> to vector<2x96xf32>
    %139 = arith.negf %138 : vector<2x96xf32>
    %140 = math.exp %139 : vector<2x96xf32>
    %cst_25 = arith.constant 1.000000e+00 : f32
    %141 = vector.broadcast %cst_25 : f32 to vector<2x96xf32>
    %142 = arith.addf %141, %140 : vector<2x96xf32>
    %143 = arith.divf %141, %142 : vector<2x96xf32>
    %144 = vector.extract_strided_slice %143 {offsets = [0, 0], sizes = [2, 32], strides = [1, 1]} : vector<2x96xf32> to vector<2x32xf32>
    %145 = vector.extract_strided_slice %143 {offsets = [0, 32], sizes = [2, 32], strides = [1, 1]} : vector<2x96xf32> to vector<2x32xf32>
    %146 = vector.extract_strided_slice %143 {offsets = [0, 64], sizes = [2, 32], strides = [1, 1]} : vector<2x96xf32> to vector<2x32xf32>
    %147 = arith.mulf %144, %137 : vector<2x32xf32>
    %148 = arith.mulf %145, %129 : vector<2x32xf32>
    %149 = arith.addf %147, %148 : vector<2x32xf32>
    %150 = math.tanh %149 : vector<2x32xf32>
    %151 = arith.mulf %146, %150 : vector<2x32xf32>
    %152 = vector.extract_strided_slice %7 {offsets = [0, 7, 0], sizes = [2, 1, 128], strides = [1, 1, 1]} : vector<2x8x128xf32> to vector<2x1x128xf32>
    %153 = vector.shape_cast %152 : vector<2x1x128xf32> to vector<2x128xf32>
    %cst_26 = arith.constant dense<0.000000e+00> : vector<2x128xf32>
    %154 = tpu.matmul %151, %0, %cst_26 {dimension_numbers = #tpu.dot_dimension_numbers<[1], [0], [0], [1], [0, 0, 1, 1], [], []>} : vector<2x32xf32>, vector<32x128xf32>, vector<2x128xf32> -> vector<2x128xf32>
    %155 = arith.addf %153, %154 : vector<2x128xf32>
    %156 = vector.extract_strided_slice %155 {offsets = [0, 0], sizes = [2, 32], strides = [1, 1]} : vector<2x128xf32> to vector<2x32xf32>
    %157 = math.tanh %156 : vector<2x32xf32>
    %158 = vector.extract_strided_slice %155 {offsets = [0, 32], sizes = [2, 96], strides = [1, 1]} : vector<2x128xf32> to vector<2x96xf32>
    %159 = arith.negf %158 : vector<2x96xf32>
    %160 = math.exp %159 : vector<2x96xf32>
    %cst_27 = arith.constant 1.000000e+00 : f32
    %161 = vector.broadcast %cst_27 : f32 to vector<2x96xf32>
    %162 = arith.addf %161, %160 : vector<2x96xf32>
    %163 = arith.divf %161, %162 : vector<2x96xf32>
    %164 = vector.extract_strided_slice %163 {offsets = [0, 0], sizes = [2, 32], strides = [1, 1]} : vector<2x96xf32> to vector<2x32xf32>
    %165 = vector.extract_strided_slice %163 {offsets = [0, 32], sizes = [2, 32], strides = [1, 1]} : vector<2x96xf32> to vector<2x32xf32>
    %166 = vector.extract_strided_slice %163 {offsets = [0, 64], sizes = [2, 32], strides = [1, 1]} : vector<2x96xf32> to vector<2x32xf32>
    %167 = arith.mulf %164, %157 : vector<2x32xf32>
    %168 = arith.mulf %165, %149 : vector<2x32xf32>
    %169 = arith.addf %167, %168 : vector<2x32xf32>
    %170 = math.tanh %169 : vector<2x32xf32>
    %171 = arith.mulf %166, %170 : vector<2x32xf32>
    %172 = vector.extract_strided_slice %7 {offsets = [0, 7, 0], sizes = [2, 1, 128], strides = [1, 1, 1]} : vector<2x8x128xf32> to vector<2x1x128xf32>
    %173 = vector.shape_cast %172 : vector<2x1x128xf32> to vector<2x128xf32>
    %cst_28 = arith.constant dense<0.000000e+00> : vector<2x128xf32>
    %174 = tpu.matmul %171, %0, %cst_28 {dimension_numbers = #tpu.dot_dimension_numbers<[1], [0], [0], [1], [0, 0, 1, 1], [], []>} : vector<2x32xf32>, vector<32x128xf32>, vector<2x128xf32> -> vector<2x128xf32>
    %175 = arith.addf %173, %174 : vector<2x128xf32>
    %176 = vector.extract_strided_slice %175 {offsets = [0, 0], sizes = [2, 32], strides = [1, 1]} : vector<2x128xf32> to vector<2x32xf32>
    %177 = math.tanh %176 : vector<2x32xf32>
    %178 = vector.extract_strided_slice %175 {offsets = [0, 32], sizes = [2, 96], strides = [1, 1]} : vector<2x128xf32> to vector<2x96xf32>
    %179 = arith.negf %178 : vector<2x96xf32>
    %180 = math.exp %179 : vector<2x96xf32>
    %cst_29 = arith.constant 1.000000e+00 : f32
    %181 = vector.broadcast %cst_29 : f32 to vector<2x96xf32>
    %182 = arith.addf %181, %180 : vector<2x96xf32>
    %183 = arith.divf %181, %182 : vector<2x96xf32>
    %184 = vector.extract_strided_slice %183 {offsets = [0, 0], sizes = [2, 32], strides = [1, 1]} : vector<2x96xf32> to vector<2x32xf32>
    %185 = vector.extract_strided_slice %183 {offsets = [0, 32], sizes = [2, 32], strides = [1, 1]} : vector<2x96xf32> to vector<2x32xf32>
    %186 = vector.extract_strided_slice %183 {offsets = [0, 64], sizes = [2, 32], strides = [1, 1]} : vector<2x96xf32> to vector<2x32xf32>
    %187 = arith.mulf %184, %177 : vector<2x32xf32>
    %188 = arith.mulf %185, %169 : vector<2x32xf32>
    %189 = arith.addf %187, %188 : vector<2x32xf32>
    %190 = math.tanh %189 : vector<2x32xf32>
    %191 = arith.mulf %186, %190 : vector<2x32xf32>
    %192 = vector.extract_strided_slice %7 {offsets = [0, 6, 0], sizes = [2, 1, 128], strides = [1, 1, 1]} : vector<2x8x128xf32> to vector<2x1x128xf32>
    %193 = vector.shape_cast %192 : vector<2x1x128xf32> to vector<2x128xf32>
    %cst_30 = arith.constant dense<0.000000e+00> : vector<2x128xf32>
    %194 = tpu.matmul %191, %0, %cst_30 {dimension_numbers = #tpu.dot_dimension_numbers<[1], [0], [0], [1], [0, 0, 1, 1], [], []>} : vector<2x32xf32>, vector<32x128xf32>, vector<2x128xf32> -> vector<2x128xf32>
    %195 = arith.addf %193, %194 : vector<2x128xf32>
    %196 = vector.extract_strided_slice %195 {offsets = [0, 0], sizes = [2, 32], strides = [1, 1]} : vector<2x128xf32> to vector<2x32xf32>
    %197 = math.tanh %196 : vector<2x32xf32>
    %198 = vector.extract_strided_slice %195 {offsets = [0, 32], sizes = [2, 96], strides = [1, 1]} : vector<2x128xf32> to vector<2x96xf32>
    %199 = arith.negf %198 : vector<2x96xf32>
    %200 = math.exp %199 : vector<2x96xf32>
    %cst_31 = arith.constant 1.000000e+00 : f32
    %201 = vector.broadcast %cst_31 : f32 to vector<2x96xf32>
    %202 = arith.addf %201, %200 : vector<2x96xf32>
    %203 = arith.divf %201, %202 : vector<2x96xf32>
    %204 = vector.extract_strided_slice %203 {offsets = [0, 0], sizes = [2, 32], strides = [1, 1]} : vector<2x96xf32> to vector<2x32xf32>
    %205 = vector.extract_strided_slice %203 {offsets = [0, 32], sizes = [2, 32], strides = [1, 1]} : vector<2x96xf32> to vector<2x32xf32>
    %206 = vector.extract_strided_slice %203 {offsets = [0, 64], sizes = [2, 32], strides = [1, 1]} : vector<2x96xf32> to vector<2x32xf32>
    %207 = arith.mulf %204, %197 : vector<2x32xf32>
    %208 = arith.mulf %205, %189 : vector<2x32xf32>
    %209 = arith.addf %207, %208 : vector<2x32xf32>
    %210 = math.tanh %209 : vector<2x32xf32>
    %211 = arith.mulf %206, %210 : vector<2x32xf32>
    %212 = vector.extract_strided_slice %7 {offsets = [0, 5, 0], sizes = [2, 1, 128], strides = [1, 1, 1]} : vector<2x8x128xf32> to vector<2x1x128xf32>
    %213 = vector.shape_cast %212 : vector<2x1x128xf32> to vector<2x128xf32>
    %cst_32 = arith.constant dense<0.000000e+00> : vector<2x128xf32>
    %214 = tpu.matmul %211, %0, %cst_32 {dimension_numbers = #tpu.dot_dimension_numbers<[1], [0], [0], [1], [0, 0, 1, 1], [], []>} : vector<2x32xf32>, vector<32x128xf32>, vector<2x128xf32> -> vector<2x128xf32>
    %215 = arith.addf %213, %214 : vector<2x128xf32>
    %216 = vector.extract_strided_slice %215 {offsets = [0, 0], sizes = [2, 32], strides = [1, 1]} : vector<2x128xf32> to vector<2x32xf32>
    %217 = math.tanh %216 : vector<2x32xf32>
    %218 = vector.extract_strided_slice %215 {offsets = [0, 32], sizes = [2, 96], strides = [1, 1]} : vector<2x128xf32> to vector<2x96xf32>
    %219 = arith.negf %218 : vector<2x96xf32>
    %220 = math.exp %219 : vector<2x96xf32>
    %cst_33 = arith.constant 1.000000e+00 : f32
    %221 = vector.broadcast %cst_33 : f32 to vector<2x96xf32>
    %222 = arith.addf %221, %220 : vector<2x96xf32>
    %223 = arith.divf %221, %222 : vector<2x96xf32>
    %224 = vector.extract_strided_slice %223 {offsets = [0, 0], sizes = [2, 32], strides = [1, 1]} : vector<2x96xf32> to vector<2x32xf32>
    %225 = vector.extract_strided_slice %223 {offsets = [0, 32], sizes = [2, 32], strides = [1, 1]} : vector<2x96xf32> to vector<2x32xf32>
    %226 = vector.extract_strided_slice %223 {offsets = [0, 64], sizes = [2, 32], strides = [1, 1]} : vector<2x96xf32> to vector<2x32xf32>
    %227 = arith.mulf %224, %217 : vector<2x32xf32>
    %228 = arith.mulf %225, %209 : vector<2x32xf32>
    %229 = arith.addf %227, %228 : vector<2x32xf32>
    %230 = math.tanh %229 : vector<2x32xf32>
    %231 = arith.mulf %226, %230 : vector<2x32xf32>
    %232 = vector.extract_strided_slice %7 {offsets = [0, 4, 0], sizes = [2, 1, 128], strides = [1, 1, 1]} : vector<2x8x128xf32> to vector<2x1x128xf32>
    %233 = vector.shape_cast %232 : vector<2x1x128xf32> to vector<2x128xf32>
    %cst_34 = arith.constant dense<0.000000e+00> : vector<2x128xf32>
    %234 = tpu.matmul %231, %0, %cst_34 {dimension_numbers = #tpu.dot_dimension_numbers<[1], [0], [0], [1], [0, 0, 1, 1], [], []>} : vector<2x32xf32>, vector<32x128xf32>, vector<2x128xf32> -> vector<2x128xf32>
    %235 = arith.addf %233, %234 : vector<2x128xf32>
    %236 = vector.extract_strided_slice %235 {offsets = [0, 0], sizes = [2, 32], strides = [1, 1]} : vector<2x128xf32> to vector<2x32xf32>
    %237 = math.tanh %236 : vector<2x32xf32>
    %238 = vector.extract_strided_slice %235 {offsets = [0, 32], sizes = [2, 96], strides = [1, 1]} : vector<2x128xf32> to vector<2x96xf32>
    %239 = arith.negf %238 : vector<2x96xf32>
    %240 = math.exp %239 : vector<2x96xf32>
    %cst_35 = arith.constant 1.000000e+00 : f32
    %241 = vector.broadcast %cst_35 : f32 to vector<2x96xf32>
    %242 = arith.addf %241, %240 : vector<2x96xf32>
    %243 = arith.divf %241, %242 : vector<2x96xf32>
    %244 = vector.extract_strided_slice %243 {offsets = [0, 0], sizes = [2, 32], strides = [1, 1]} : vector<2x96xf32> to vector<2x32xf32>
    %245 = vector.extract_strided_slice %243 {offsets = [0, 32], sizes = [2, 32], strides = [1, 1]} : vector<2x96xf32> to vector<2x32xf32>
    %246 = vector.extract_strided_slice %243 {offsets = [0, 64], sizes = [2, 32], strides = [1, 1]} : vector<2x96xf32> to vector<2x32xf32>
    %247 = arith.mulf %244, %237 : vector<2x32xf32>
    %248 = arith.mulf %245, %229 : vector<2x32xf32>
    %249 = arith.addf %247, %248 : vector<2x32xf32>
    %250 = math.tanh %249 : vector<2x32xf32>
    %251 = arith.mulf %246, %250 : vector<2x32xf32>
    %252 = vector.extract_strided_slice %7 {offsets = [0, 3, 0], sizes = [2, 1, 128], strides = [1, 1, 1]} : vector<2x8x128xf32> to vector<2x1x128xf32>
    %253 = vector.shape_cast %252 : vector<2x1x128xf32> to vector<2x128xf32>
    %cst_36 = arith.constant dense<0.000000e+00> : vector<2x128xf32>
    %254 = tpu.matmul %251, %0, %cst_36 {dimension_numbers = #tpu.dot_dimension_numbers<[1], [0], [0], [1], [0, 0, 1, 1], [], []>} : vector<2x32xf32>, vector<32x128xf32>, vector<2x128xf32> -> vector<2x128xf32>
    %255 = arith.addf %253, %254 : vector<2x128xf32>
    %256 = vector.extract_strided_slice %255 {offsets = [0, 0], sizes = [2, 32], strides = [1, 1]} : vector<2x128xf32> to vector<2x32xf32>
    %257 = math.tanh %256 : vector<2x32xf32>
    %258 = vector.extract_strided_slice %255 {offsets = [0, 32], sizes = [2, 96], strides = [1, 1]} : vector<2x128xf32> to vector<2x96xf32>
    %259 = arith.negf %258 : vector<2x96xf32>
    %260 = math.exp %259 : vector<2x96xf32>
    %cst_37 = arith.constant 1.000000e+00 : f32
    %261 = vector.broadcast %cst_37 : f32 to vector<2x96xf32>
    %262 = arith.addf %261, %260 : vector<2x96xf32>
    %263 = arith.divf %261, %262 : vector<2x96xf32>
    %264 = vector.extract_strided_slice %263 {offsets = [0, 0], sizes = [2, 32], strides = [1, 1]} : vector<2x96xf32> to vector<2x32xf32>
    %265 = vector.extract_strided_slice %263 {offsets = [0, 32], sizes = [2, 32], strides = [1, 1]} : vector<2x96xf32> to vector<2x32xf32>
    %266 = vector.extract_strided_slice %263 {offsets = [0, 64], sizes = [2, 32], strides = [1, 1]} : vector<2x96xf32> to vector<2x32xf32>
    %267 = arith.mulf %264, %257 : vector<2x32xf32>
    %268 = arith.mulf %265, %249 : vector<2x32xf32>
    %269 = arith.addf %267, %268 : vector<2x32xf32>
    %270 = math.tanh %269 : vector<2x32xf32>
    %271 = arith.mulf %266, %270 : vector<2x32xf32>
    %272 = vector.extract_strided_slice %7 {offsets = [0, 2, 0], sizes = [2, 1, 128], strides = [1, 1, 1]} : vector<2x8x128xf32> to vector<2x1x128xf32>
    %273 = vector.shape_cast %272 : vector<2x1x128xf32> to vector<2x128xf32>
    %cst_38 = arith.constant dense<0.000000e+00> : vector<2x128xf32>
    %274 = tpu.matmul %271, %0, %cst_38 {dimension_numbers = #tpu.dot_dimension_numbers<[1], [0], [0], [1], [0, 0, 1, 1], [], []>} : vector<2x32xf32>, vector<32x128xf32>, vector<2x128xf32> -> vector<2x128xf32>
    %275 = arith.addf %273, %274 : vector<2x128xf32>
    %276 = vector.extract_strided_slice %275 {offsets = [0, 0], sizes = [2, 32], strides = [1, 1]} : vector<2x128xf32> to vector<2x32xf32>
    %277 = math.tanh %276 : vector<2x32xf32>
    %278 = vector.extract_strided_slice %275 {offsets = [0, 32], sizes = [2, 96], strides = [1, 1]} : vector<2x128xf32> to vector<2x96xf32>
    %279 = arith.negf %278 : vector<2x96xf32>
    %280 = math.exp %279 : vector<2x96xf32>
    %cst_39 = arith.constant 1.000000e+00 : f32
    %281 = vector.broadcast %cst_39 : f32 to vector<2x96xf32>
    %282 = arith.addf %281, %280 : vector<2x96xf32>
    %283 = arith.divf %281, %282 : vector<2x96xf32>
    %284 = vector.extract_strided_slice %283 {offsets = [0, 0], sizes = [2, 32], strides = [1, 1]} : vector<2x96xf32> to vector<2x32xf32>
    %285 = vector.extract_strided_slice %283 {offsets = [0, 32], sizes = [2, 32], strides = [1, 1]} : vector<2x96xf32> to vector<2x32xf32>
    %286 = vector.extract_strided_slice %283 {offsets = [0, 64], sizes = [2, 32], strides = [1, 1]} : vector<2x96xf32> to vector<2x32xf32>
    %287 = arith.mulf %284, %277 : vector<2x32xf32>
    %288 = arith.mulf %285, %269 : vector<2x32xf32>
    %289 = arith.addf %287, %288 : vector<2x32xf32>
    %290 = math.tanh %289 : vector<2x32xf32>
    %291 = arith.mulf %286, %290 : vector<2x32xf32>
    %292 = vector.extract_strided_slice %7 {offsets = [0, 1, 0], sizes = [2, 1, 128], strides = [1, 1, 1]} : vector<2x8x128xf32> to vector<2x1x128xf32>
    %293 = vector.shape_cast %292 : vector<2x1x128xf32> to vector<2x128xf32>
    %cst_40 = arith.constant dense<0.000000e+00> : vector<2x128xf32>
    %294 = tpu.matmul %291, %0, %cst_40 {dimension_numbers = #tpu.dot_dimension_numbers<[1], [0], [0], [1], [0, 0, 1, 1], [], []>} : vector<2x32xf32>, vector<32x128xf32>, vector<2x128xf32> -> vector<2x128xf32>
    %295 = arith.addf %293, %294 : vector<2x128xf32>
    %296 = vector.extract_strided_slice %295 {offsets = [0, 0], sizes = [2, 32], strides = [1, 1]} : vector<2x128xf32> to vector<2x32xf32>
    %297 = math.tanh %296 : vector<2x32xf32>
    %298 = vector.extract_strided_slice %295 {offsets = [0, 32], sizes = [2, 96], strides = [1, 1]} : vector<2x128xf32> to vector<2x96xf32>
    %299 = arith.negf %298 : vector<2x96xf32>
    %300 = math.exp %299 : vector<2x96xf32>
    %cst_41 = arith.constant 1.000000e+00 : f32
    %301 = vector.broadcast %cst_41 : f32 to vector<2x96xf32>
    %302 = arith.addf %301, %300 : vector<2x96xf32>
    %303 = arith.divf %301, %302 : vector<2x96xf32>
    %304 = vector.extract_strided_slice %303 {offsets = [0, 0], sizes = [2, 32], strides = [1, 1]} : vector<2x96xf32> to vector<2x32xf32>
    %305 = vector.extract_strided_slice %303 {offsets = [0, 32], sizes = [2, 32], strides = [1, 1]} : vector<2x96xf32> to vector<2x32xf32>
    %306 = vector.extract_strided_slice %303 {offsets = [0, 64], sizes = [2, 32], strides = [1, 1]} : vector<2x96xf32> to vector<2x32xf32>
    %307 = arith.mulf %304, %297 : vector<2x32xf32>
    %308 = arith.mulf %305, %289 : vector<2x32xf32>
    %309 = arith.addf %307, %308 : vector<2x32xf32>
    %310 = math.tanh %309 : vector<2x32xf32>
    %311 = arith.mulf %306, %310 : vector<2x32xf32>
    %312 = vector.extract_strided_slice %7 {offsets = [0, 0, 0], sizes = [2, 1, 128], strides = [1, 1, 1]} : vector<2x8x128xf32> to vector<2x1x128xf32>
    %313 = vector.shape_cast %312 : vector<2x1x128xf32> to vector<2x128xf32>
    %cst_42 = arith.constant dense<0.000000e+00> : vector<2x128xf32>
    %314 = tpu.matmul %311, %0, %cst_42 {dimension_numbers = #tpu.dot_dimension_numbers<[1], [0], [0], [1], [0, 0, 1, 1], [], []>} : vector<2x32xf32>, vector<32x128xf32>, vector<2x128xf32> -> vector<2x128xf32>
    %315 = arith.addf %313, %314 : vector<2x128xf32>
    %316 = vector.extract_strided_slice %315 {offsets = [0, 0], sizes = [2, 32], strides = [1, 1]} : vector<2x128xf32> to vector<2x32xf32>
    %317 = math.tanh %316 : vector<2x32xf32>
    %318 = vector.extract_strided_slice %315 {offsets = [0, 32], sizes = [2, 96], strides = [1, 1]} : vector<2x128xf32> to vector<2x96xf32>
    %319 = arith.negf %318 : vector<2x96xf32>
    %320 = math.exp %319 : vector<2x96xf32>
    %cst_43 = arith.constant 1.000000e+00 : f32
    %321 = vector.broadcast %cst_43 : f32 to vector<2x96xf32>
    %322 = arith.addf %321, %320 : vector<2x96xf32>
    %323 = arith.divf %321, %322 : vector<2x96xf32>
    %324 = vector.extract_strided_slice %323 {offsets = [0, 0], sizes = [2, 32], strides = [1, 1]} : vector<2x96xf32> to vector<2x32xf32>
    %325 = vector.extract_strided_slice %323 {offsets = [0, 32], sizes = [2, 32], strides = [1, 1]} : vector<2x96xf32> to vector<2x32xf32>
    %326 = vector.extract_strided_slice %323 {offsets = [0, 64], sizes = [2, 32], strides = [1, 1]} : vector<2x96xf32> to vector<2x32xf32>
    %327 = arith.mulf %324, %317 : vector<2x32xf32>
    %328 = arith.mulf %325, %309 : vector<2x32xf32>
    %329 = arith.addf %327, %328 : vector<2x32xf32>
    %330 = math.tanh %329 : vector<2x32xf32>
    %331 = arith.mulf %326, %330 : vector<2x32xf32>
    %332 = vector.shape_cast %31 : vector<2x32xf32> to vector<2x1x32xf32>
    %333 = vector.shape_cast %51 : vector<2x32xf32> to vector<2x1x32xf32>
    %334 = vector.shape_cast %71 : vector<2x32xf32> to vector<2x1x32xf32>
    %335 = vector.shape_cast %91 : vector<2x32xf32> to vector<2x1x32xf32>
    %336 = vector.shape_cast %111 : vector<2x32xf32> to vector<2x1x32xf32>
    %337 = vector.shape_cast %131 : vector<2x32xf32> to vector<2x1x32xf32>
    %338 = vector.shape_cast %151 : vector<2x32xf32> to vector<2x1x32xf32>
    %339 = vector.shape_cast %171 : vector<2x32xf32> to vector<2x1x32xf32>
    %340 = tpu.concatenate %332, %333, %334, %335, %336, %337, %338, %339 in 1 : vector<2x1x32xf32>, vector<2x1x32xf32>, vector<2x1x32xf32>, vector<2x1x32xf32>, vector<2x1x32xf32>, vector<2x1x32xf32>, vector<2x1x32xf32>, vector<2x1x32xf32> -> vector<2x8x32xf32>
    %341 = vector.shape_cast %191 : vector<2x32xf32> to vector<2x1x32xf32>
    %342 = vector.shape_cast %211 : vector<2x32xf32> to vector<2x1x32xf32>
    %343 = vector.shape_cast %231 : vector<2x32xf32> to vector<2x1x32xf32>
    %344 = vector.shape_cast %251 : vector<2x32xf32> to vector<2x1x32xf32>
    %345 = vector.shape_cast %271 : vector<2x32xf32> to vector<2x1x32xf32>
    %346 = vector.shape_cast %291 : vector<2x32xf32> to vector<2x1x32xf32>
    %347 = vector.shape_cast %311 : vector<2x32xf32> to vector<2x1x32xf32>
    %348 = vector.shape_cast %331 : vector<2x32xf32> to vector<2x1x32xf32>
    %349 = tpu.concatenate %341, %342, %343, %344, %345, %346, %347, %348 in 1 : vector<2x1x32xf32>, vector<2x1x32xf32>, vector<2x1x32xf32>, vector<2x1x32xf32>, vector<2x1x32xf32>, vector<2x1x32xf32>, vector<2x1x32xf32>, vector<2x1x32xf32> -> vector<2x8x32xf32>
    %350 = tpu.concatenate %340, %349 in 2 : vector<2x8x32xf32>, vector<2x8x32xf32> -> vector<2x8x64xf32>
    %c0_44 = arith.constant 0 : index
    %c0_45 = arith.constant 0 : index
    %c0_46 = arith.constant 0 : index
    %351 = vector.load %arg5[%c0_44, %c0_45, %c0_46] : memref<2x8x64xf32, #tpu.memory_space<vmem>>, vector<2x8x64xf32>
    tpu.vector_store %arg5[%c0_44, %c0_45, %c0_46], %350 {strides = array<i32>} : memref<2x8x64xf32, #tpu.memory_space<vmem>>, vector<2x8x64xf32>,
    %352 = vector.shape_cast %171 : vector<2x32xf32> to vector<1x2x32xf32>
    %353 = vector.shape_cast %169 : vector<2x32xf32> to vector<1x2x32xf32>
    %354 = vector.shape_cast %331 : vector<2x32xf32> to vector<1x2x32xf32>
    %355 = vector.shape_cast %329 : vector<2x32xf32> to vector<1x2x32xf32>
    %356 = tpu.concatenate %352, %353, %354, %355 in 0 : vector<1x2x32xf32>, vector<1x2x32xf32>, vector<1x2x32xf32>, vector<1x2x32xf32> -> vector<4x2x32xf32>
    %c0_47 = arith.constant 0 : index
    %c0_48 = arith.constant 0 : index
    %c0_49 = arith.constant 0 : index
    %357 = vector.load %arg6[%c0_47, %c0_48, %c0_49] : memref<4x2x32xf32, #tpu.memory_space<vmem>>, vector<4x2x32xf32>
    tpu.vector_store %arg6[%c0_47, %c0_48, %c0_49], %356 {strides = array<i32>} : memref<4x2x32xf32, #tpu.memory_space<vmem>>, vector<4x2x32xf32>,
    return
  }
}

</mosaic_0001>

<bundles_post_ra>
// kernel: lstm_singlebi_forward.1
= control target key start
LH: loop header
LB: loop body
LE: loop exit
PB: predicated region body
PF: predicated region fallthrough
CT: control target
= control target key end

     0   :  { %v3289_v3 = vmov 0.0|0.0   ;;  %vm3290_vm0 = vmmov 0   ;;  %v3291_v8 = vmov 0.0   ;;  %vm40_vm1 = vcmask 261120   ;;  %s3888_s0 = inlined_call_operand.vmem [shape: f32[16,32], index: 0, kind: input, shape index: {}]   ;;  %s3889_s1 = inlined_call_operand.vmem [shape: f32[2,2,32], index: 1, kind: input, shape index: {}]   ;;  %s3890_s2 = inlined_call_operand.vmem [shape: f32[32,128], index: 2, kind: input, shape index: {}]   ;;  %s3891_s3 = inlined_call_operand.vmem [shape: f32[32,128], index: 3, kind: input, shape index: {}]   ;;  %s3892_s4 = inlined_call_operand.vmem [shape: f32[1,128], index: 4, kind: input, shape index: {}]   ;;  %s3893_s5 = inlined_call_operand.hbm [shape: f32[2,8,64], index: 5, kind: output, shape index: {0}]   ;;  %s3894_s6 = inlined_call_operand.vmem [shape: f32[4,2,32], index: 6, kind: output, shape index: {1}]  }
   0x1   :  { %v29_v0 = vld [vmem:[%s3890_s2] sm:$0xff]  ;;  %v30_v1 = vld [vmem:[%s3890_s2 + $0x8] sm:$0xff]  ;;  %2904 = vmatprep.subr.bf16.mxu1 %v3289_v3  ;;  %v31_v6 = vld [vmem:[%s3890_s2 + $0x10] sm:$0xff]  ;;  %2728 = vmatprep.mubr.msk.f32.mxu1 %vm3290_vm0, %v3291_v8 }
   0x2   :  { %v23_v2 = vld [vmem:[%s3891_s3] sm:$0xff]  ;;  %v2896_v4 = vpack.c.bf16 %v30_v1, %v29_v0  ;;  %v24_v5 = vld [vmem:[%s3891_s3 + $0x8] sm:$0xff]  ;;  %v32_v7 = vld [vmem:[%s3890_s2 + $0x18] sm:$0xff] }
   0x3   :  { %v3354_v9 = vpack.c.bf16 %v24_v5, %v23_v2  ;;  %v2900_v10 = vpack.c.bf16 %v32_v7, %v31_v6  ;;  %v25_v11 = vld [vmem:[%s3891_s3 + $0x10] sm:$0xff]  ;;  %v26_v12 = vld [vmem:[%s3891_s3 + $0x18] sm:$0xff]  ;;  %v27_v13 = vld [vmem:[%s3888_s0] sm:$0xff] }
   0x4   :  { %2897 = vmatprep.subr.bf16.mxu0 %v2896_v4  ;;  %2717 = vmatprep.mubr.msk.f32.mxu0 %vm40_vm1, %v27_v13  ;;  %v2574_v14 = vld [vmem:[%s3889_s1 + $0x2] sm:$0x3]  ;;  %v3370_v15 = vpack.c.bf16 %v26_v12, %v25_v11 }
   0x5   :  { %2906 = vmatpush3.bf16.msra.mxu1 %v3354_v9  ;;  %2899 = vmatpush3.bf16.msra.mxu0 %v2896_v4  ;;  %v229_v16 = vrot.slane %v2574_v14, 1 }
   0x6   :  { %12 = vsyncpa [#allocation3], 0  ;;  %2907 = vmatprep.subr.bf16.mxu1 %v3289_v3  ;;  %2901 = vmatprep.subr.bf16.mxu0 %v2900_v10  ;;  %s3292_s3 = smov 64   ;;  %v122_v17 = vld [vmem:[%s3889_s1] sm:$0x3]  ;;  %v28_v18 = vld [vmem:[%s3888_s0 + $0x8] sm:$0xff] }
   0x7   :  { %232 = vrot.lane.b32.xlu0 %v229_v16, %s3292_s3  ;;  %v2571_v19 = vld [vmem:[%s3892_s4] ss:$0 sm:$0xff]  ;;  %s3293_s4 = smov 32   ;;  %s3294_s20 = smov 96   ;;  %vm263_vm2 = vcmask 1041409   ;;  %vm2413_vm3 = vcmask 1040384  }
   0x8   :  { %vm2416_vm4 = vcmask 1041408   ;;  %vm2419_vm5 = vcmask 1042432   ;;  %vm2422_vm6 = vcmask 1043456   ;;  %vm2425_vm7 = vcmask 1044480   ;;  %s3295_s29 = smov [#allocation2]  }
   0x9   :  { %2909 = vmatpush3.bf16.msra.mxu1 %v3370_v15  ;;  %2903 = vmatpush3.bf16.msra.mxu0 %v2900_v10  ;;  %vm2428_vm8 = vcmask 1045504   ;;  %vm2431_vm9 = vcmask 1046528   ;;  %vm2541_vm10 = vcmask 261127   ;;  %vm2543_vm11 = vcmask 253952   ;;  %s2556_s30 = sshll.u32 %s3295_s29, 4  ;;  %s2557_s30 = int_to_ptr.vmem [resolvable:$true] %s2556_s30 }
   0xa   :  { %2910 = vmatprep.subr.bf16.mxu0 %v3289_v3  ;;  %2916 = vmatprep.subr.bf16.mxu1 %v3289_v3  ;;  %vm2498_vm12 = vcmask 523264   ;;  %s3265_s13 = scalar_lea.vmem %s2557_s30, 256  ;;  %p3270_p1 = scmp.lt.s32.totalorder %s2557_s30, %s2557_s30 }
   0xb   :  { %230 = vrot.lane.b32.xlu0 %v2574_v14, %s3292_s3  ;;  %p3266_p0 = scmp.ne.s32.totalorder %s2557_s30, %s3265_s13  ;;  %p3271_p2 = scmp.lt.s32.totalorder %s3265_s13, %s3265_s13 }
   0xc   :  { %2729 = vmatmul.mubr.msk.f32.vlgmr.msra.gmra.mrb[0].mxu1 %vm40_vm1, %v122_v17  ;;  %2718 = vmatmul.mubr.msk.f32.vlgmr.msra.gmra.mrb[0].mxu0 %vm40_vm1, %v28_v18 }
   0xd   :  { %2912 = vmatpush3.bf16.msra.mxu0 %v3354_v9  ;;  %2739 = vmatprep.mubr.msk.f32.mxu0 %vm3290_vm0, %v3291_v8  ;;  %p3272_p3 = por %p3271_p2, %p3270_p1 }
   0xe   :  { %2913 = vmatprep.subr.bf16.mxu0 %v3289_v3  ;;  %2918 = vmatpush3.bf16.msra.mxu1 %v3354_v9 }
   0xf   :  { %2919 = vmatprep.subr.bf16.mxu1 %v3289_v3  ;;  %2750 = vmatprep.mubr.msk.f32.mxu1 %vm3290_vm0, %v3291_v8  ;;  %p3273_p4 = pnand %p3272_p3, %p3266_p0 }
  0x11   :  { %2915 = vmatpush3.bf16.msra.mxu0 %v3370_v15 }
  0x12   :  { %2921 = vmatpush3.bf16.msra.mxu1 %v3370_v15  ;;  %2922 = vmatprep.subr.bf16.mxu0 %v3289_v3 }
  0x13   :  { %2928 = vmatprep.subr.bf16.mxu1 %v3289_v3 }
  0x79   :  { %v233_v37 = vpop.permute.xlu0 %232 }
  0x7d   :  { %v231_v38 = vpop.permute.xlu0 %230 }
  0xdf   :  { %v194_v20 = vpop.f32.mrb[0].mxu1  ;;  %v2719_v21 = vpop.f32.mrb[0].mxu0 }
  0xe0   :  { %v199_v22 = vrot.slane %v194_v20, 1  ;;  %v3401_v23 = vadd.f32 %v2719_v21, %v2571_v19  ;;  %v2730_v24 = vpop.f32.mrb[1].mxu1  ;;  %v113_v25 = vpop.f32.mrb[1].mxu0 }
  0xe1   :  { %v3403_v26 = vadd.f32 %v2571_v19, %v113_v25 }
  0xe2   :  { %v203_v27 = vadd.f32 %v199_v22, %v3401_v23 }
  0xe3   :  { %v202_v28 = vadd.f32 %v194_v20, %v3403_v26 }
  0xe4   :  { %3009 = vtanh.f32 %v203_v27  ;;  %v2577_v29 = vmul.f32 -1.442695, %v203_v27 }
  0xe5   :  { %v2576_v30 = vmul.f32 -1.442695, %v202_v28 }
  0xe6   :  { %3011 = vpow2.f32 %v2577_v29 }
  0xe7   :  { %3013 = vpow2.f32 %v2576_v30 }
  0xe8   :  { %3015 = vtanh.f32 %v202_v28 }
  0xee   :  { %v3010_v31 = vpop.eup %3009 }
  0xef   :  { %222 = vrot.lane.b32.xlu1 %v3010_v31, %s3293_s4 }
  0xf0   :  { %v3012_v32 = vpop.eup %3011 }
  0xf1   :  { %v3014_v33 = vpop.eup %3013  ;;  %v213_v34 = vadd.f32 1.0, %v3012_v32 }
  0xf2   :  { %v3016_v35 = vpop.eup %3015  ;;  %v212_v36 = vadd.f32 1.0, %v3014_v33 }
  0xf3   :  { %3017 = vrcp.f32 %v213_v34  ;;  %220 = vrot.lane.b32.xlu1 %v3016_v35, %s3293_s4 }
  0xf4   :  { %3019 = vrcp.f32 %v212_v36 }
  0xfd   :  { %v3018_v39 = vpop.eup %3017 }
  0xfe   :  { %v3020_v40 = vpop.eup %3019  ;;  %v237_v41 = vmul.f32 %v3018_v39, %v233_v37 }
  0xff   :  { %v236_v42 = vmul.f32 %v3020_v40, %v231_v38 }
 0x100   :  { %242 = vrot.lane.b32.xlu0 %v237_v41, %s3294_s20 }
 0x101   :  { %240 = vrot.lane.b32.xlu1 %v236_v42, %s3294_s20 }
 0x161   :  { %v223_v43 = vpop.permute.xlu1 %222 }
 0x162   :  { %v227_v45 = vmul.f32 %v3018_v39, %v223_v43 }
 0x165   :  { %v221_v44 = vpop.permute.xlu1 %220 }
 0x166   :  { %v226_v46 = vmul.f32 %v3020_v40, %v221_v44 }
 0x172   :  { %v243_v47 = vpop.permute.xlu0 %242 }
 0x173   :  { %v247_v48 = vadd.f32 %v243_v47, %v227_v45  ;;  %v241_v49 = vpop.permute.xlu1 %240 }
 0x174   :  { %v246_v50 = vadd.f32 %v241_v49, %v226_v46 }
 0x175   :  { %3021 = vtanh.f32 %v247_v48  ;;  %v372_v60 = vrot.slane %v247_v48, 7 }
 0x176   :  { %3023 = vtanh.f32 %v246_v50  ;;  %v371_v53 = vrot.slane %v246_v50, 7 }
 0x17f   :  { %v3022_v51 = vpop.eup %3021 }
 0x180   :  { %v3024_v52 = vpop.eup %3023  ;;  %254 = vrot.lane.b32.xlu0 %v3022_v51, %s3292_s3 }
 0x181   :  { %252 = vrot.lane.b32.xlu1 %v3024_v52, %s3292_s3 }
 0x185   :  { %373 = vrot.lane.b32.xlu1 %v371_v53, %s3293_s4 }
 0x1f2   :  { %v255_v54 = vpop.permute.xlu0 %254 }
 0x1f3   :  { %v3414_v55 = vmul.f32 %v3018_v39, %v255_v54  ;;  %v253_v56 = vpop.permute.xlu1 %252 }
 0x1f4   :  { %v3416_v57 = vmul.f32 %v3020_v40, %v253_v56 }
 0x1f5   :  { %v262_v58 = vrot.slane %v3414_v55, 7 }
 0x1f7   :  { %v264_v59 = vsel %vm263_vm2, %v262_v58, %v3416_v57  ;;  %v374_v18 = vpop.permute.xlu1 %373 }
 0x1f8   :  { %265 = vrot.lane.b32.xlu0 %v264_v59, %s3293_s4 }
 0x1fc   :  { %375 = vrot.lane.b32.xlu0 %v372_v60, %s3293_s4 }
 0x26a   :  { %v266_v61 = vpop.permute.xlu0 %265 }
 0x26b   :  { %2740 = vmatmul.mubr.msk.f32.vlgmr.msra.gmra.mrb[2].mxu0 %vm40_vm1, %v266_v61 }
 0x26c   :  { %2924 = vmatpush3.bf16.msra.mxu0 %v3354_v9  ;;  %2761 = vmatprep.mubr.msk.f32.mxu0 %vm3290_vm0, %v3291_v8 }
 0x26d   :  { %2925 = vmatprep.subr.bf16.mxu0 %v3289_v3 }
 0x26e   :  { %v376_v16 = vpop.permute.xlu0 %375 }
 0x270   :  { %2927 = vmatpush3.bf16.msra.mxu0 %v3370_v15 }
 0x271   :  { %2934 = vmatprep.subr.bf16.mxu0 %v3289_v3 }
 0x33e   :  { %v335_v62 = vpop.f32.mrb[2].mxu0 }
 0x33f   :  { %v340_v63 = vrot.slane %v335_v62, 7  ;;  %v344_v0 = vadd.f32 %v335_v62, %v3401_v23  ;;  %v2741_v1 = vpop.f32.mrb[3].mxu0 }
 0x341   :  { %v343_v2 = vadd.f32 %v340_v63, %v3403_v26  ;;  %3025 = vtanh.f32 %v344_v0  ;;  %v2580_v4 = vmul.f32 -1.442695, %v344_v0 }
 0x343   :  { %3027 = vtanh.f32 %v343_v2  ;;  %v2579_v5 = vmul.f32 -1.442695, %v343_v2 }
 0x344   :  { %3029 = vpow2.f32 %v2580_v4 }
 0x345   :  { %3031 = vpow2.f32 %v2579_v5 }
 0x34b   :  { %v3026_v6 = vpop.eup %3025 }
 0x34c   :  { %363 = vrot.lane.b32.xlu0 %v3026_v6, %s3293_s4 }
 0x34d   :  { %v3028_v7 = vpop.eup %3027 }
 0x34e   :  { %v3030_v10 = vpop.eup %3029  ;;  %361 = vrot.lane.b32.xlu1 %v3028_v7, %s3293_s4 }
 0x34f   :  { %v3032_v11 = vpop.eup %3031  ;;  %v354_v12 = vadd.f32 1.0, %v3030_v10 }
 0x350   :  { %v353_v13 = vadd.f32 1.0, %v3032_v11 }
 0x351   :  { %3033 = vrcp.f32 %v354_v12 }
 0x352   :  { %3035 = vrcp.f32 %v353_v13 }
 0x35b   :  { %v3034_v14 = vpop.eup %3033 }
 0x35c   :  { %v3036_v17 = vpop.eup %3035  ;;  %v380_v19 = vmul.f32 %v3034_v14, %v376_v16 }
 0x35d   :  { %v379_v20 = vmul.f32 %v3036_v17, %v374_v18 }
 0x35e   :  { %385 = vrot.lane.b32.xlu0 %v380_v19, %s3294_s20 }
 0x35f   :  { %383 = vrot.lane.b32.xlu1 %v379_v20, %s3294_s20 }
 0x3be   :  { %v364_v21 = vpop.permute.xlu0 %363 }
 0x3bf   :  { %v368_v24 = vmul.f32 %v3034_v14, %v364_v21 }
 0x3c0   :  { %v362_v22 = vpop.permute.xlu1 %361 }
 0x3c1   :  { %v367_v25 = vmul.f32 %v3036_v17, %v362_v22 }
 0x3d0   :  { %v386_v27 = vpop.permute.xlu0 %385 }
 0x3d1   :  { %v390_v28 = vadd.f32 %v386_v27, %v368_v24  ;;  %v384_v29 = vpop.permute.xlu1 %383 }
 0x3d2   :  { %v389_v30 = vadd.f32 %v384_v29, %v367_v25 }
 0x3d3   :  { %3037 = vtanh.f32 %v390_v28  ;;  %v515_v40 = vrot.slane %v390_v28, 7 }
 0x3d4   :  { %3039 = vtanh.f32 %v389_v30  ;;  %v514_v33 = vrot.slane %v389_v30, 7 }
 0x3dd   :  { %v3038_v31 = vpop.eup %3037 }
 0x3de   :  { %v3040_v32 = vpop.eup %3039  ;;  %397 = vrot.lane.b32.xlu0 %v3038_v31, %s3292_s3 }
 0x3df   :  { %395 = vrot.lane.b32.xlu1 %v3040_v32, %s3292_s3 }
 0x3e2   :  { %516 = vrot.lane.b32.xlu0 %v514_v33, %s3293_s4 }
 0x450   :  { %v398_v34 = vpop.permute.xlu0 %397 }
 0x451   :  { %v396_v35 = vpop.permute.xlu1 %395  ;;  %v3441_v37 = vmul.f32 %v3034_v14, %v398_v34 }
 0x452   :  { %v3439_v36 = vmul.f32 %v3036_v17, %v396_v35 }
 0x453   :  { %v2415_v20 = vsel %vm2413_vm3, %v3414_v55, %v3441_v37 }
 0x454   :  { %v405_v38 = vrot.slane %v3439_v36, 1  ;;  %v517_v59 = vpop.permute.xlu0 %516  ;;  %v2414_v18 = vsel %vm2413_vm3, %v3416_v57, %v3439_v36 }
 0x456   :  { %v406_v39 = vsel %vm263_vm2, %v3441_v37, %v405_v38 }
 0x457   :  { %407 = vrot.lane.b32.xlu1 %v406_v39, %s3293_s4 }
 0x45b   :  { %518 = vrot.lane.b32.xlu1 %v515_v40, %s3293_s4 }
 0x4c9   :  { %v408_v41 = vpop.permute.xlu1 %407 }
 0x4ca   :  { %2751 = vmatmul.mubr.msk.f32.vlgmr.msra.gmra.mrb[2].mxu1 %vm40_vm1, %v408_v41 }
 0x4cb   :  { %2930 = vmatpush3.bf16.msra.mxu1 %v3354_v9  ;;  %2772 = vmatprep.mubr.msk.f32.mxu1 %vm3290_vm0, %v3291_v8 }
 0x4cc   :  { %2931 = vmatprep.subr.bf16.mxu1 %v3289_v3 }
 0x4cd   :  { %v519_v61 = vpop.permute.xlu1 %518 }
 0x4cf   :  { %2933 = vmatpush3.bf16.msra.mxu1 %v3370_v15 }
 0x4d0   :  { %2940 = vmatprep.subr.bf16.mxu1 %v3289_v3 }
 0x59d   :  { %v477_v42 = vpop.f32.mrb[2].mxu1 }
 0x59e   :  { %v482_v43 = vrot.slane %v477_v42, 6  ;;  %v483_v44 = vrot.slane %v477_v42, 7  ;;  %v2752_v45 = vpop.f32.mrb[3].mxu1 }
 0x5a0   :  { %v486_v46 = vadd.f32 %v482_v43, %v3403_v26  ;;  %v487_v47 = vadd.f32 %v483_v44, %v3401_v23 }
 0x5a2   :  { %3041 = vtanh.f32 %v486_v46  ;;  %v2582_v48 = vmul.f32 -1.442695, %v486_v46  ;;  %v2583_v49 = vmul.f32 -1.442695, %v487_v47 }
 0x5a3   :  { %3043 = vtanh.f32 %v487_v47 }
 0x5a4   :  { %3045 = vpow2.f32 %v2582_v48 }
 0x5a5   :  { %3047 = vpow2.f32 %v2583_v49 }
 0x5ac   :  { %v3042_v50 = vpop.eup %3041 }
 0x5ad   :  { %v3044_v51 = vpop.eup %3043  ;;  %504 = vrot.lane.b32.xlu0 %v3042_v50, %s3293_s4 }
 0x5ae   :  { %v3046_v52 = vpop.eup %3045  ;;  %506 = vrot.lane.b32.xlu1 %v3044_v51, %s3293_s4 }
 0x5af   :  { %v3048_v53 = vpop.eup %3047  ;;  %v496_v54 = vadd.f32 1.0, %v3046_v52 }
 0x5b0   :  { %v497_v56 = vadd.f32 1.0, %v3048_v53 }
 0x5b1   :  { %3049 = vrcp.f32 %v496_v54 }
 0x5b2   :  { %3051 = vrcp.f32 %v497_v56 }
 0x5bb   :  { %v3050_v58 = vpop.eup %3049 }
 0x5bc   :  { %v3052_v60 = vpop.eup %3051  ;;  %v522_v62 = vmul.f32 %v3050_v58, %v517_v59 }
 0x5bd   :  { %v523_v63 = vmul.f32 %v3052_v60, %v519_v61 }
 0x5be   :  { %526 = vrot.lane.b32.xlu0 %v522_v62, %s3294_s20 }
 0x5bf   :  { %528 = vrot.lane.b32.xlu1 %v523_v63, %s3294_s20 }
 0x61f   :  { %v505_v0 = vpop.permute.xlu0 %504 }
 0x620   :  { %v507_v1 = vpop.permute.xlu1 %506  ;;  %v510_v2 = vmul.f32 %v3050_v58, %v505_v0 }
 0x621   :  { %v511_v4 = vmul.f32 %v3052_v60, %v507_v1 }
 0x630   :  { %v527_v5 = vpop.permute.xlu0 %526 }
 0x631   :  { %v529_v6 = vpop.permute.xlu1 %528  ;;  %v532_v7 = vadd.f32 %v527_v5, %v510_v2 }
 0x632   :  { %v533_v10 = vadd.f32 %v529_v6, %v511_v4 }
 0x633   :  { %3053 = vtanh.f32 %v532_v7  ;;  %v658_v13 = vrot.slane %v532_v7, 7 }
 0x634   :  { %3055 = vtanh.f32 %v533_v10  ;;  %v659_v28 = vrot.slane %v533_v10, 7 }
 0x63d   :  { %v3054_v11 = vpop.eup %3053 }
 0x63e   :  { %v3056_v12 = vpop.eup %3055  ;;  %538 = vrot.lane.b32.xlu0 %v3054_v11, %s3292_s3 }
 0x63f   :  { %540 = vrot.lane.b32.xlu1 %v3056_v12, %s3292_s3 }
 0x643   :  { %660 = vrot.lane.b32.xlu1 %v658_v13, %s3293_s4 }
 0x6b0   :  { %v539_v14 = vpop.permute.xlu0 %538 }
 0x6b1   :  { %v541_v16 = vpop.permute.xlu1 %540  ;;  %v544_v17 = vmul.f32 %v3050_v58, %v539_v14 }
 0x6b2   :  { %v545_v19 = vmul.f32 %v3052_v60, %v541_v16 }
 0x6b3   :  { %v548_v21 = vrot.slane %v544_v17, 2  ;;  %v3471_v22 = vsel %vm2416_vm4, %v2414_v18, %v544_v17 }
 0x6b4   :  { %v549_v24 = vrot.slane %v545_v19, 1  ;;  %v3474_v25 = vsel %vm2416_vm4, %v2415_v20, %v545_v19 }
 0x6b5   :  { %v661_v43 = vpop.permute.xlu1 %660 }
 0x6b6   :  { %v550_v27 = vsel %vm263_vm2, %v549_v24, %v548_v21 }
 0x6b7   :  { %551 = vrot.lane.b32.xlu0 %v550_v27, %s3293_s4 }
 0x6bb   :  { %662 = vrot.lane.b32.xlu0 %v659_v28, %s3293_s4 }
 0x729   :  { %v552_v57 = vpop.permute.xlu0 %551 }
 0x72a   :  { %2762 = vmatmul.mubr.msk.f32.vlgmr.msra.gmra.mrb[4].mxu0 %vm40_vm1, %v552_v57 }
 0x72b   :  { %2936 = vmatpush3.bf16.msra.mxu0 %v3354_v9  ;;  %2783 = vmatprep.mubr.msk.f32.mxu0 %vm3290_vm0, %v3291_v8 }
 0x72c   :  { %2937 = vmatprep.subr.bf16.mxu0 %v3289_v3 }
 0x72d   :  { %v663_v45 = vpop.permute.xlu0 %662 }
 0x72f   :  { %2939 = vmatpush3.bf16.msra.mxu0 %v3370_v15 }
 0x730   :  { %2946 = vmatprep.subr.bf16.mxu0 %v3289_v3 }
 0x7fd   :  { %v621_v55 = vpop.f32.mrb[4].mxu0 }
 0x7fe   :  { %v626_v29 = vrot.slane %v621_v55, 5  ;;  %v627_v30 = vrot.slane %v621_v55, 6  ;;  %v2763_v31 = vpop.f32.mrb[5].mxu0 }
 0x800   :  { %v630_v32 = vadd.f32 %v626_v29, %v3403_v26  ;;  %v631_v33 = vadd.f32 %v627_v30, %v3401_v23 }
 0x802   :  { %3057 = vtanh.f32 %v630_v32  ;;  %v2585_v34 = vmul.f32 -1.442695, %v630_v32  ;;  %v2586_v35 = vmul.f32 -1.442695, %v631_v33 }
 0x803   :  { %3059 = vtanh.f32 %v631_v33 }
 0x804   :  { %3061 = vpow2.f32 %v2585_v34 }
 0x805   :  { %3063 = vpow2.f32 %v2586_v35 }
 0x80c   :  { %v3058_v36 = vpop.eup %3057 }
 0x80d   :  { %v3060_v37 = vpop.eup %3059  ;;  %648 = vrot.lane.b32.xlu1 %v3058_v36, %s3293_s4 }
 0x80e   :  { %v3062_v38 = vpop.eup %3061  ;;  %650 = vrot.lane.b32.xlu0 %v3060_v37, %s3293_s4 }
 0x80f   :  { %v3064_v39 = vpop.eup %3063  ;;  %v640_v40 = vadd.f32 1.0, %v3062_v38 }
 0x810   :  { %v641_v41 = vadd.f32 1.0, %v3064_v39 }
 0x811   :  { %3065 = vrcp.f32 %v640_v40 }
 0x812   :  { %3067 = vrcp.f32 %v641_v41 }
 0x81b   :  { %v3066_v42 = vpop.eup %3065 }
 0x81c   :  { %v3068_v44 = vpop.eup %3067  ;;  %v666_v46 = vmul.f32 %v3066_v42, %v661_v43 }
 0x81d   :  { %v667_v47 = vmul.f32 %v3068_v44, %v663_v45 }
 0x81e   :  { %670 = vrot.lane.b32.xlu1 %v666_v46, %s3294_s20 }
 0x81f   :  { %672 = vrot.lane.b32.xlu0 %v667_v47, %s3294_s20 }
 0x87f   :  { %v649_v48 = vpop.permute.xlu1 %648 }
 0x880   :  { %v651_v49 = vpop.permute.xlu0 %650  ;;  %v654_v50 = vmul.f32 %v3066_v42, %v649_v48 }
 0x881   :  { %v655_v51 = vmul.f32 %v3068_v44, %v651_v49 }
 0x890   :  { %v671_v52 = vpop.permute.xlu1 %670 }
 0x891   :  { %v676_v53 = vadd.f32 %v671_v52, %v654_v50  ;;  %v673_v54 = vpop.permute.xlu0 %672 }
 0x892   :  { %v677_v56 = vadd.f32 %v673_v54, %v655_v51 }
 0x893   :  { %3069 = vtanh.f32 %v676_v53  ;;  %v802_v60 = vrot.slane %v676_v53, 7 }
 0x894   :  { %3071 = vtanh.f32 %v677_v56  ;;  %v803_v7 = vrot.slane %v677_v56, 7 }
 0x89d   :  { %v3070_v58 = vpop.eup %3069 }
 0x89e   :  { %v3072_v59 = vpop.eup %3071  ;;  %682 = vrot.lane.b32.xlu1 %v3070_v58, %s3292_s3 }
 0x89f   :  { %684 = vrot.lane.b32.xlu0 %v3072_v59, %s3292_s3 }
 0x8a3   :  { %804 = vrot.lane.b32.xlu0 %v802_v60, %s3293_s4 }
 0x910   :  { %v683_v61 = vpop.permute.xlu1 %682 }
 0x911   :  { %v688_v62 = vmul.f32 %v3066_v42, %v683_v61  ;;  %v685_v63 = vpop.permute.xlu0 %684 }
 0x912   :  { %v689_v0 = vmul.f32 %v3068_v44, %v685_v63 }
 0x913   :  { %v692_v1 = vrot.slane %v688_v62, 3  ;;  %v3497_v2 = vsel %vm2419_vm5, %v3471_v22, %v688_v62 }
 0x914   :  { %v693_v4 = vrot.slane %v689_v0, 2  ;;  %v3501_v5 = vsel %vm2419_vm5, %v3474_v25, %v689_v0 }
 0x915   :  { %v805_v57 = vpop.permute.xlu0 %804 }
 0x916   :  { %v694_v6 = vsel %vm263_vm2, %v693_v4, %v692_v1 }
 0x917   :  { %695 = vrot.lane.b32.xlu1 %v694_v6, %s3293_s4 }
 0x91b   :  { %806 = vrot.lane.b32.xlu1 %v803_v7, %s3293_s4 }
 0x989   :  { %v696_v10 = vpop.permute.xlu1 %695 }
 0x98a   :  { %2773 = vmatmul.mubr.msk.f32.vlgmr.msra.gmra.mrb[4].mxu1 %vm40_vm1, %v696_v10 }
 0x98b   :  { %2942 = vmatpush3.bf16.msra.mxu1 %v3354_v9  ;;  %2794 = vmatprep.mubr.msk.f32.mxu1 %vm3290_vm0, %v3291_v8 }
 0x98c   :  { %2943 = vmatprep.subr.bf16.mxu1 %v3289_v3 }
 0x98d   :  { %v807_v29 = vpop.permute.xlu1 %806 }
 0x98f   :  { %2945 = vmatpush3.bf16.msra.mxu1 %v3370_v15 }
 0x990   :  { %2952 = vmatprep.subr.bf16.mxu1 %v3289_v3 }
 0xa5d   :  { %v765_v11 = vpop.f32.mrb[4].mxu1 }
 0xa5e   :  { %v770_v12 = vrot.slane %v765_v11, 4  ;;  %v771_v13 = vrot.slane %v765_v11, 5  ;;  %v2774_v14 = vpop.f32.mrb[5].mxu1 }
 0xa60   :  { %v774_v16 = vadd.f32 %v770_v12, %v3403_v26  ;;  %v775_v17 = vadd.f32 %v771_v13, %v3401_v23 }
 0xa62   :  { %3073 = vtanh.f32 %v774_v16  ;;  %v2588_v18 = vmul.f32 -1.442695, %v774_v16  ;;  %v2589_v19 = vmul.f32 -1.442695, %v775_v17 }
 0xa63   :  { %3075 = vtanh.f32 %v775_v17 }
 0xa64   :  { %3077 = vpow2.f32 %v2588_v18 }
 0xa65   :  { %3079 = vpow2.f32 %v2589_v19 }
 0xa6c   :  { %v3074_v20 = vpop.eup %3073 }
 0xa6d   :  { %v3076_v21 = vpop.eup %3075  ;;  %792 = vrot.lane.b32.xlu0 %v3074_v20, %s3293_s4 }
 0xa6e   :  { %v3078_v22 = vpop.eup %3077  ;;  %794 = vrot.lane.b32.xlu1 %v3076_v21, %s3293_s4 }
 0xa6f   :  { %v3080_v24 = vpop.eup %3079  ;;  %v784_v25 = vadd.f32 1.0, %v3078_v22 }
 0xa70   :  { %v785_v27 = vadd.f32 1.0, %v3080_v24 }
 0xa71   :  { %3081 = vrcp.f32 %v784_v25 }
 0xa72   :  { %3083 = vrcp.f32 %v785_v27 }
 0xa7b   :  { %v3082_v28 = vpop.eup %3081 }
 0xa7c   :  { %v3084_v55 = vpop.eup %3083  ;;  %v810_v30 = vmul.f32 %v3082_v28, %v805_v57 }
 0xa7d   :  { %v811_v31 = vmul.f32 %v3084_v55, %v807_v29 }
 0xa7e   :  { %814 = vrot.lane.b32.xlu0 %v810_v30, %s3294_s20 }
 0xa7f   :  { %816 = vrot.lane.b32.xlu1 %v811_v31, %s3294_s20 }
 0xadf   :  { %v793_v32 = vpop.permute.xlu0 %792 }
 0xae0   :  { %v795_v33 = vpop.permute.xlu1 %794  ;;  %v798_v34 = vmul.f32 %v3082_v28, %v793_v32 }
 0xae1   :  { %v799_v35 = vmul.f32 %v3084_v55, %v795_v33 }
 0xaf0   :  { %v815_v36 = vpop.permute.xlu0 %814 }
 0xaf1   :  { %v817_v37 = vpop.permute.xlu1 %816  ;;  %v820_v38 = vadd.f32 %v815_v36, %v798_v34 }
 0xaf2   :  { %v821_v39 = vadd.f32 %v817_v37, %v799_v35 }
 0xaf3   :  { %3085 = vtanh.f32 %v820_v38  ;;  %v946_v42 = vrot.slane %v820_v38, 7 }
 0xaf4   :  { %3087 = vtanh.f32 %v821_v39  ;;  %v947_v52 = vrot.slane %v821_v39, 7 }
 0xafd   :  { %v3086_v40 = vpop.eup %3085 }
 0xafe   :  { %v3088_v41 = vpop.eup %3087  ;;  %826 = vrot.lane.b32.xlu0 %v3086_v40, %s3292_s3 }
 0xaff   :  { %828 = vrot.lane.b32.xlu1 %v3088_v41, %s3292_s3 }
 0xb03   :  { %948 = vrot.lane.b32.xlu1 %v946_v42, %s3293_s4 }
 0xb70   :  { %v827_v43 = vpop.permute.xlu0 %826 }
 0xb71   :  { %v829_v44 = vpop.permute.xlu1 %828  ;;  %v832_v45 = vmul.f32 %v3082_v28, %v827_v43 }
 0xb72   :  { %v833_v46 = vmul.f32 %v3084_v55, %v829_v44 }
 0xb73   :  { %v836_v47 = vrot.slane %v832_v45, 4  ;;  %v3524_v48 = vsel %vm2422_vm6, %v3497_v2, %v832_v45 }
 0xb74   :  { %v837_v49 = vrot.slane %v833_v46, 3  ;;  %v3528_v50 = vsel %vm2422_vm6, %v3501_v5, %v833_v46 }
 0xb75   :  { %v949_v10 = vpop.permute.xlu1 %948 }
 0xb76   :  { %v838_v51 = vsel %vm263_vm2, %v837_v49, %v836_v47 }
 0xb77   :  { %839 = vrot.lane.b32.xlu0 %v838_v51, %s3293_s4 }
 0xb7b   :  { %950 = vrot.lane.b32.xlu0 %v947_v52, %s3293_s4 }
 0xbe9   :  { %v840_v53 = vpop.permute.xlu0 %839 }
 0xbea   :  { %2784 = vmatmul.mubr.msk.f32.vlgmr.msra.gmra.mrb[6].mxu0 %vm40_vm1, %v840_v53 }
 0xbeb   :  { %2948 = vmatpush3.bf16.msra.mxu0 %v3354_v9  ;;  %2805 = vmatprep.mubr.msk.f32.mxu0 %vm3290_vm0, %v3291_v8 }
 0xbec   :  { %2949 = vmatprep.subr.bf16.mxu0 %v3289_v3 }
 0xbed   :  { %v951_v12 = vpop.permute.xlu0 %950 }
 0xbef   :  { %2951 = vmatpush3.bf16.msra.mxu0 %v3370_v15 }
 0xbf0   :  { %2958 = vmatprep.subr.bf16.mxu0 %v3289_v3 }
 0xcbd   :  { %v909_v54 = vpop.f32.mrb[6].mxu0 }
 0xcbe   :  { %v914_v56 = vrot.slane %v909_v54, 3  ;;  %v915_v58 = vrot.slane %v909_v54, 4  ;;  %v2785_v59 = vpop.f32.mrb[7].mxu0 }
 0xcc0   :  { %v918_v60 = vadd.f32 %v914_v56, %v3403_v26  ;;  %v919_v61 = vadd.f32 %v915_v58, %v3401_v23 }
 0xcc2   :  { %3089 = vtanh.f32 %v918_v60  ;;  %v2591_v62 = vmul.f32 -1.442695, %v918_v60  ;;  %v2592_v63 = vmul.f32 -1.442695, %v919_v61 }
 0xcc3   :  { %3091 = vtanh.f32 %v919_v61 }
 0xcc4   :  { %3093 = vpow2.f32 %v2591_v62 }
 0xcc5   :  { %3095 = vpow2.f32 %v2592_v63 }
 0xccc   :  { %v3090_v0 = vpop.eup %3089 }
 0xccd   :  { %v3092_v1 = vpop.eup %3091  ;;  %936 = vrot.lane.b32.xlu1 %v3090_v0, %s3293_s4 }
 0xcce   :  { %v3094_v2 = vpop.eup %3093  ;;  %938 = vrot.lane.b32.xlu0 %v3092_v1, %s3293_s4 }
 0xccf   :  { %v3096_v4 = vpop.eup %3095  ;;  %v928_v5 = vadd.f32 1.0, %v3094_v2 }
 0xcd0   :  { %v929_v6 = vadd.f32 1.0, %v3096_v4 }
 0xcd1   :  { %3097 = vrcp.f32 %v928_v5 }
 0xcd2   :  { %3099 = vrcp.f32 %v929_v6 }
 0xcdb   :  { %v3098_v7 = vpop.eup %3097 }
 0xcdc   :  { %v3100_v11 = vpop.eup %3099  ;;  %v954_v13 = vmul.f32 %v3098_v7, %v949_v10 }
 0xcdd   :  { %v955_v14 = vmul.f32 %v3100_v11, %v951_v12 }
 0xcde   :  { %958 = vrot.lane.b32.xlu1 %v954_v13, %s3294_s20 }
 0xcdf   :  { %960 = vrot.lane.b32.xlu0 %v955_v14, %s3294_s20 }
 0xd3f   :  { %v937_v16 = vpop.permute.xlu1 %936 }
 0xd40   :  { %v939_v17 = vpop.permute.xlu0 %938  ;;  %v942_v18 = vmul.f32 %v3098_v7, %v937_v16 }
 0xd41   :  { %v943_v19 = vmul.f32 %v3100_v11, %v939_v17 }
 0xd50   :  { %v959_v20 = vpop.permute.xlu1 %958 }
 0xd51   :  { %v964_v21 = vadd.f32 %v959_v20, %v942_v18  ;;  %v961_v22 = vpop.permute.xlu0 %960 }
 0xd52   :  { %v965_v24 = vadd.f32 %v961_v22, %v943_v19 }
 0xd53   :  { %3101 = vtanh.f32 %v964_v21  ;;  %v1090_v28 = vrot.slane %v964_v21, 7 }
 0xd54   :  { %3103 = vtanh.f32 %v965_v24  ;;  %v1091_v36 = vrot.slane %v965_v24, 7 }
 0xd5d   :  { %v3102_v25 = vpop.eup %3101 }
 0xd5e   :  { %v3104_v27 = vpop.eup %3103  ;;  %970 = vrot.lane.b32.xlu1 %v3102_v25, %s3292_s3 }
 0xd5f   :  { %972 = vrot.lane.b32.xlu0 %v3104_v27, %s3292_s3 }
 0xd63   :  { %1092 = vrot.lane.b32.xlu0 %v1090_v28, %s3293_s4 }
 0xdd0   :  { %v971_v57 = vpop.permute.xlu1 %970 }
 0xdd1   :  { %v976_v55 = vmul.f32 %v3098_v7, %v971_v57  ;;  %v973_v29 = vpop.permute.xlu0 %972 }
 0xdd2   :  { %v977_v30 = vmul.f32 %v3100_v11, %v973_v29 }
 0xdd3   :  { %v980_v31 = vrot.slane %v976_v55, 5  ;;  %v3551_v32 = vsel %vm2425_vm7, %v3524_v48, %v976_v55 }
 0xdd4   :  { %v981_v33 = vrot.slane %v977_v30, 4  ;;  %v3555_v34 = vsel %vm2425_vm7, %v3528_v50, %v977_v30 }
 0xdd5   :  { %v1093_v53 = vpop.permute.xlu0 %1092 }
 0xdd6   :  { %v982_v35 = vsel %vm263_vm2, %v981_v33, %v980_v31 }
 0xdd7   :  { %983 = vrot.lane.b32.xlu1 %v982_v35, %s3293_s4 }
 0xddb   :  { %1094 = vrot.lane.b32.xlu1 %v1091_v36, %s3293_s4 }
 0xe49   :  { %v984_v37 = vpop.permute.xlu1 %983 }
 0xe4a   :  { %2795 = vmatmul.mubr.msk.f32.vlgmr.msra.gmra.mrb[6].mxu1 %vm40_vm1, %v984_v37 }
 0xe4b   :  { %2954 = vmatpush3.bf16.msra.mxu1 %v3354_v9  ;;  %2816 = vmatprep.mubr.msk.f32.mxu1 %vm3290_vm0, %v3291_v8 }
 0xe4c   :  { %2955 = vmatprep.subr.bf16.mxu1 %v3289_v3 }
 0xe4d   :  { %v1095_v56 = vpop.permute.xlu1 %1094 }
 0xe4f   :  { %2957 = vmatpush3.bf16.msra.mxu1 %v3370_v15 }
 0xe50   :  { %2964 = vmatprep.subr.bf16.mxu1 %v3289_v3 }
 0xf1d   :  { %v1053_v38 = vpop.f32.mrb[6].mxu1 }
 0xf1e   :  { %v1058_v39 = vrot.slane %v1053_v38, 2  ;;  %v1059_v40 = vrot.slane %v1053_v38, 3  ;;  %v2796_v41 = vpop.f32.mrb[7].mxu1 }
 0xf20   :  { %v1062_v42 = vadd.f32 %v1058_v39, %v3403_v26  ;;  %v1063_v43 = vadd.f32 %v1059_v40, %v3401_v23 }
 0xf22   :  { %3105 = vtanh.f32 %v1062_v42  ;;  %v2594_v44 = vmul.f32 -1.442695, %v1062_v42  ;;  %v2595_v45 = vmul.f32 -1.442695, %v1063_v43 }
 0xf23   :  { %3107 = vtanh.f32 %v1063_v43 }
 0xf24   :  { %3109 = vpow2.f32 %v2594_v44 }
 0xf25   :  { %3111 = vpow2.f32 %v2595_v45 }
 0xf2c   :  { %v3106_v46 = vpop.eup %3105 }
 0xf2d   :  { %v3108_v47 = vpop.eup %3107  ;;  %1080 = vrot.lane.b32.xlu0 %v3106_v46, %s3293_s4 }
 0xf2e   :  { %v3110_v48 = vpop.eup %3109  ;;  %1082 = vrot.lane.b32.xlu1 %v3108_v47, %s3293_s4 }
 0xf2f   :  { %v3112_v49 = vpop.eup %3111  ;;  %v1072_v50 = vadd.f32 1.0, %v3110_v48 }
 0xf30   :  { %v1073_v51 = vadd.f32 1.0, %v3112_v49 }
 0xf31   :  { %3113 = vrcp.f32 %v1072_v50 }
 0xf32   :  { %3115 = vrcp.f32 %v1073_v51 }
 0xf3b   :  { %v3114_v52 = vpop.eup %3113 }
 0xf3c   :  { %v3116_v54 = vpop.eup %3115  ;;  %v1098_v58 = vmul.f32 %v3114_v52, %v1093_v53 }
 0xf3d   :  { %v1099_v59 = vmul.f32 %v3116_v54, %v1095_v56 }
 0xf3e   :  { %1102 = vrot.lane.b32.xlu0 %v1098_v58, %s3294_s20 }
 0xf3f   :  { %1104 = vrot.lane.b32.xlu1 %v1099_v59, %s3294_s20 }
 0xf9f   :  { %v1081_v60 = vpop.permute.xlu0 %1080 }
 0xfa0   :  { %v1083_v61 = vpop.permute.xlu1 %1082  ;;  %v1086_v62 = vmul.f32 %v3114_v52, %v1081_v60 }
 0xfa1   :  { %v1087_v63 = vmul.f32 %v3116_v54, %v1083_v61 }
 0xfb0   :  { %v1103_v0 = vpop.permute.xlu0 %1102 }
 0xfb1   :  { %v1105_v1 = vpop.permute.xlu1 %1104  ;;  %v1108_v2 = vadd.f32 %v1103_v0, %v1086_v62 }
 0xfb2   :  { %v1109_v4 = vadd.f32 %v1105_v1, %v1087_v63 }
 0xfb3   :  { %3117 = vtanh.f32 %v1108_v2  ;;  %v1234_v7 = vrot.slane %v1108_v2, 7 }
 0xfb4   :  { %3119 = vtanh.f32 %v1109_v4  ;;  %v1235_v20 = vrot.slane %v1109_v4, 7 }
 0xfbd   :  { %v3118_v5 = vpop.eup %3117 }
 0xfbe   :  { %v3120_v6 = vpop.eup %3119  ;;  %1114 = vrot.lane.b32.xlu0 %v3118_v5, %s3292_s3 }
 0xfbf   :  { %1116 = vrot.lane.b32.xlu1 %v3120_v6, %s3292_s3 }
 0xfc3   :  { %1236 = vrot.lane.b32.xlu1 %v1234_v7, %s3293_s4 }
0x1030   :  { %v1115_v10 = vpop.permute.xlu0 %1114 }
0x1031   :  { %v1117_v11 = vpop.permute.xlu1 %1116  ;;  %v1120_v12 = vmul.f32 %v3114_v52, %v1115_v10 }
0x1032   :  { %v1121_v13 = vmul.f32 %v3116_v54, %v1117_v11 }
0x1033   :  { %v1124_v14 = vrot.slane %v1120_v12, 6  ;;  %v3578_v16 = vsel %vm2428_vm8, %v3551_v32, %v1120_v12 }
0x1034   :  { %v1125_v17 = vrot.slane %v1121_v13, 5  ;;  %v3582_v18 = vsel %vm2428_vm8, %v3555_v34, %v1121_v13 }
0x1035   :  { %v1237_v37 = vpop.permute.xlu1 %1236 }
0x1036   :  { %v1126_v19 = vsel %vm263_vm2, %v1125_v17, %v1124_v14 }
0x1037   :  { %1127 = vrot.lane.b32.xlu0 %v1126_v19, %s3293_s4 }
0x103b   :  { %1238 = vrot.lane.b32.xlu0 %v1235_v20, %s3293_s4 }
0x10a9   :  { %v1128_v21 = vpop.permute.xlu0 %1127 }
0x10aa   :  { %2806 = vmatmul.mubr.msk.f32.vlgmr.msra.gmra.mrb[8].mxu0 %vm40_vm1, %v1128_v21 }
0x10ab   :  { %2960 = vmatpush3.bf16.msra.mxu0 %v3354_v9  ;;  %2827 = vmatprep.mubr.msk.f32.mxu0 %vm3290_vm0, %v3291_v8 }
0x10ac   :  { %2961 = vmatprep.subr.bf16.mxu0 %v3289_v3 }
0x10ad   :  { %v1239_v39 = vpop.permute.xlu0 %1238 }
0x10af   :  { %2963 = vmatpush3.bf16.msra.mxu0 %v3370_v15 }
0x10b0   :  { %2970 = vmatprep.subr.bf16.mxu0 %v3289_v3 }
0x117d   :  { %v1197_v22 = vpop.f32.mrb[8].mxu0 }
0x117e   :  { %v1202_v24 = vrot.slane %v1197_v22, 1  ;;  %v1203_v25 = vrot.slane %v1197_v22, 2  ;;  %v2807_v27 = vpop.f32.mrb[9].mxu0 }
0x1180   :  { %v1206_v28 = vadd.f32 %v1202_v24, %v3403_v26  ;;  %v1207_v57 = vadd.f32 %v1203_v25, %v3401_v23 }
0x1182   :  { %3121 = vtanh.f32 %v1206_v28  ;;  %v2597_v55 = vmul.f32 -1.442695, %v1206_v28  ;;  %v2598_v29 = vmul.f32 -1.442695, %v1207_v57 }
0x1183   :  { %3123 = vtanh.f32 %v1207_v57 }
0x1184   :  { %3125 = vpow2.f32 %v2597_v55 }
0x1185   :  { %3127 = vpow2.f32 %v2598_v29 }
0x118c   :  { %v3122_v30 = vpop.eup %3121 }
0x118d   :  { %v3124_v31 = vpop.eup %3123  ;;  %1224 = vrot.lane.b32.xlu1 %v3122_v30, %s3293_s4 }
0x118e   :  { %v3126_v32 = vpop.eup %3125  ;;  %1226 = vrot.lane.b32.xlu0 %v3124_v31, %s3293_s4 }
0x118f   :  { %v3128_v33 = vpop.eup %3127  ;;  %v1216_v34 = vadd.f32 1.0, %v3126_v32 }
0x1190   :  { %v1217_v35 = vadd.f32 1.0, %v3128_v33 }
0x1191   :  { %3129 = vrcp.f32 %v1216_v34 }
0x1192   :  { %3131 = vrcp.f32 %v1217_v35 }
0x119b   :  { %v3130_v36 = vpop.eup %3129 }
0x119c   :  { %v3132_v38 = vpop.eup %3131  ;;  %v1242_v40 = vmul.f32 %v3130_v36, %v1237_v37 }
0x119d   :  { %v1243_v41 = vmul.f32 %v3132_v38, %v1239_v39 }
0x119e   :  { %1246 = vrot.lane.b32.xlu1 %v1242_v40, %s3294_s20 }
0x119f   :  { %1248 = vrot.lane.b32.xlu0 %v1243_v41, %s3294_s20 }
0x11ff   :  { %v1225_v42 = vpop.permute.xlu1 %1224 }
0x1200   :  { %v1227_v43 = vpop.permute.xlu0 %1226  ;;  %v1230_v44 = vmul.f32 %v3130_v36, %v1225_v42 }
0x1201   :  { %v1231_v45 = vmul.f32 %v3132_v38, %v1227_v43 }
0x1210   :  { %v1247_v46 = vpop.permute.xlu1 %1246 }
0x1211   :  { %v3600_v47 = vadd.f32 %v1247_v46, %v1230_v44  ;;  %v1249_v48 = vpop.permute.xlu0 %1248 }
0x1212   :  { %v3602_v49 = vadd.f32 %v1249_v48, %v1231_v45 }
0x1213   :  { %3133 = vtanh.f32 %v3600_v47 }
0x1214   :  { %3135 = vtanh.f32 %v3602_v49 }
0x121d   :  { %v3134_v50 = vpop.eup %3133 }
0x121e   :  { %v3136_v51 = vpop.eup %3135  ;;  %1258 = vrot.lane.b32.xlu1 %v3134_v50, %s3292_s3 }
0x121f   :  { %1260 = vrot.lane.b32.xlu0 %v3136_v51, %s3292_s3 }
0x1223   :  { %1378 = vrot.lane.b32.xlu0 %v3600_v47, %s3293_s4 }
0x1290   :  { %v1259_v52 = vpop.permute.xlu1 %1258 }
0x1291   :  { %v3610_v53 = vmul.f32 %v3130_v36, %v1259_v52  ;;  %v1261_v54 = vpop.permute.xlu0 %1260 }
0x1292   :  { %v3612_v56 = vmul.f32 %v3132_v38, %v1261_v54 }
0x1293   :  { %v1268_v58 = vrot.slane %v3610_v53, 7 }
0x1294   :  { %v1269_v59 = vrot.slane %v3612_v56, 6  ;;  %v3619_v60 = vsel %vm2431_vm9, %v3582_v18, %v3612_v56 }
0x1295   :  { %v1379_v19 = vpop.permute.xlu0 %1378 }
0x1296   :  { %v1270_v61 = vsel %vm263_vm2, %v1269_v59, %v1268_v58 }
0x1297   :  { %1271 = vrot.lane.b32.xlu1 %v1270_v61, %s3293_s4 }
0x129b   :  { %1380 = vrot.lane.b32.xlu1 %v3602_v49, %s3293_s4 }
0x1309   :  { %v1272_v62 = vpop.permute.xlu1 %1271 }
0x130a   :  { %2817 = vmatmul.mubr.msk.f32.vlgmr.msra.gmra.mrb[8].mxu1 %vm40_vm1, %v1272_v62 }
0x130b   :  { %2966 = vmatpush3.bf16.msra.mxu1 %v3354_v9  ;;  %2838 = vmatprep.mubr.msk.f32.mxu1 %vm3290_vm0, %v3291_v8 }
0x130c   :  { %2967 = vmatprep.subr.bf16.mxu1 %v3289_v3 }
0x130d   :  { %v1381_v21 = vpop.permute.xlu1 %1380 }
0x130f   :  { %2969 = vmatpush3.bf16.msra.mxu1 %v3370_v15 }
0x1310   :  { %2976 = vmatprep.subr.bf16.mxu1 %v3289_v3 }
0x13dd   :  { %v1341_v63 = vpop.f32.mrb[8].mxu1 }
0x13de   :  { %v1346_v0 = vrot.slane %v1341_v63, 1  ;;  %v1347_v1 = vrot.slane %v1341_v63, 2  ;;  %v2818_v2 = vpop.f32.mrb[9].mxu1 }
0x13e0   :  { %v1350_v4 = vadd.f32 %v1346_v0, %v3403_v26  ;;  %v1351_v5 = vadd.f32 %v1347_v1, %v3401_v23 }
0x13e2   :  { %3137 = vtanh.f32 %v1350_v4  ;;  %v2600_v6 = vmul.f32 -1.442695, %v1350_v4  ;;  %v2601_v7 = vmul.f32 -1.442695, %v1351_v5 }
0x13e3   :  { %3139 = vtanh.f32 %v1351_v5 }
0x13e4   :  { %3141 = vpow2.f32 %v2600_v6 }
0x13e5   :  { %3143 = vpow2.f32 %v2601_v7 }
0x13ec   :  { %v3138_v10 = vpop.eup %3137 }
0x13ed   :  { %v3140_v11 = vpop.eup %3139  ;;  %1368 = vrot.lane.b32.xlu0 %v3138_v10, %s3293_s4 }
0x13ee   :  { %v3142_v12 = vpop.eup %3141  ;;  %1370 = vrot.lane.b32.xlu1 %v3140_v11, %s3293_s4 }
0x13ef   :  { %v3144_v13 = vpop.eup %3143  ;;  %v1360_v14 = vadd.f32 1.0, %v3142_v12 }
0x13f0   :  { %v1361_v17 = vadd.f32 1.0, %v3144_v13 }
0x13f1   :  { %3145 = vrcp.f32 %v1360_v14 }
0x13f2   :  { %3147 = vrcp.f32 %v1361_v17 }
0x13fb   :  { %v3146_v18 = vpop.eup %3145 }
0x13fc   :  { %v3148_v20 = vpop.eup %3147  ;;  %v1384_v22 = vmul.f32 %v3146_v18, %v1379_v19 }
0x13fd   :  { %v1385_v24 = vmul.f32 %v3148_v20, %v1381_v21 }
0x13fe   :  { %1388 = vrot.lane.b32.xlu0 %v1384_v22, %s3294_s20 }
0x13ff   :  { %1390 = vrot.lane.b32.xlu1 %v1385_v24, %s3294_s20 }
0x145f   :  { %v1369_v25 = vpop.permute.xlu0 %1368 }
0x1460   :  { %v1371_v27 = vpop.permute.xlu1 %1370  ;;  %v1374_v28 = vmul.f32 %v3146_v18, %v1369_v25 }
0x1461   :  { %v1375_v57 = vmul.f32 %v3148_v20, %v1371_v27 }
0x1470   :  { %v1389_v55 = vpop.permute.xlu0 %1388 }
0x1471   :  { %v1391_v29 = vpop.permute.xlu1 %1390  ;;  %v1394_v30 = vadd.f32 %v1389_v55, %v1374_v28 }
0x1472   :  { %v1395_v31 = vadd.f32 %v1391_v29, %v1375_v57 }
0x1473   :  { %3149 = vtanh.f32 %v1394_v30  ;;  %v1520_v34 = vrot.slane %v1394_v30, 1 }
0x1474   :  { %3151 = vtanh.f32 %v1395_v31  ;;  %v1521_v42 = vrot.slane %v1395_v31, 1 }
0x147d   :  { %v3150_v32 = vpop.eup %3149 }
0x147e   :  { %v3152_v33 = vpop.eup %3151  ;;  %1400 = vrot.lane.b32.xlu0 %v3150_v32, %s3292_s3 }
0x147f   :  { %1402 = vrot.lane.b32.xlu1 %v3152_v33, %s3292_s3 }
0x1483   :  { %1522 = vrot.lane.b32.xlu1 %v1520_v34, %s3293_s4 }
0x14f0   :  { %v1401_v35 = vpop.permute.xlu0 %1400 }
0x14f1   :  { %v1403_v36 = vpop.permute.xlu1 %1402  ;;  %v3641_v37 = vmul.f32 %v3146_v18, %v1401_v35 }
0x14f2   :  { %v3643_v38 = vmul.f32 %v3148_v20, %v1403_v36 }
0x14f3   :  { %v1410_v39 = vrot.slane %v3641_v37, 7 }
0x14f4   :  { %v1411_v40 = vrot.slane %v3643_v38, 6  ;;  %v2434_v55 = vrot.slane %v3643_v38, 7 }
0x14f5   :  { %v1523_v2 = vpop.permute.xlu1 %1522 }
0x14f6   :  { %v1412_v41 = vsel %vm263_vm2, %v1411_v40, %v1410_v39 }
0x14f7   :  { %1413 = vrot.lane.b32.xlu0 %v1412_v41, %s3293_s4 }
0x14fb   :  { %1524 = vrot.lane.b32.xlu0 %v1521_v42, %s3293_s4 }
0x1569   :  { %v1414_v43 = vpop.permute.xlu0 %1413 }
0x156a   :  { %2828 = vmatmul.mubr.msk.f32.vlgmr.msra.gmra.mrb[10].mxu0 %vm40_vm1, %v1414_v43 }
0x156b   :  { %2972 = vmatpush3.bf16.msra.mxu0 %v3354_v9  ;;  %2849 = vmatprep.mubr.msk.f32.mxu0 %vm3290_vm0, %v3291_v8 }
0x156c   :  { %2973 = vmatprep.subr.bf16.mxu0 %v3289_v3 }
0x156d   :  { %v1525_v5 = vpop.permute.xlu0 %1524 }
0x156f   :  { %2975 = vmatpush3.bf16.msra.mxu0 %v3370_v15 }
0x1570   :  { %2982 = vmatprep.subr.bf16.mxu0 %v3289_v3 }
0x163d   :  { %v1483_v44 = vpop.f32.mrb[10].mxu0 }
0x163e   :  { %v1488_v45 = vrot.slane %v1483_v44, 2  ;;  %v1489_v46 = vrot.slane %v1483_v44, 3  ;;  %v2829_v48 = vpop.f32.mrb[11].mxu0 }
0x1640   :  { %v1492_v50 = vadd.f32 %v1488_v45, %v3403_v26  ;;  %v1493_v51 = vadd.f32 %v1489_v46, %v3401_v23 }
0x1642   :  { %3153 = vtanh.f32 %v1492_v50  ;;  %v2603_v52 = vmul.f32 -1.442695, %v1492_v50  ;;  %v2604_v54 = vmul.f32 -1.442695, %v1493_v51 }
0x1643   :  { %3155 = vtanh.f32 %v1493_v51 }
0x1644   :  { %3157 = vpow2.f32 %v2603_v52 }
0x1645   :  { %3159 = vpow2.f32 %v2604_v54 }
0x164c   :  { %v3154_v58 = vpop.eup %3153 }
0x164d   :  { %v3156_v59 = vpop.eup %3155  ;;  %1510 = vrot.lane.b32.xlu1 %v3154_v58, %s3293_s4 }
0x164e   :  { %v3158_v61 = vpop.eup %3157  ;;  %1512 = vrot.lane.b32.xlu0 %v3156_v59, %s3293_s4 }
0x164f   :  { %v3160_v62 = vpop.eup %3159  ;;  %v1502_v63 = vadd.f32 1.0, %v3158_v61 }
0x1650   :  { %v1503_v0 = vadd.f32 1.0, %v3160_v62 }
0x1651   :  { %3161 = vrcp.f32 %v1502_v63 }
0x1652   :  { %3163 = vrcp.f32 %v1503_v0 }
0x165b   :  { %v3162_v1 = vpop.eup %3161 }
0x165c   :  { %v3164_v4 = vpop.eup %3163  ;;  %v1528_v6 = vmul.f32 %v3162_v1, %v1523_v2 }
0x165d   :  { %v1529_v7 = vmul.f32 %v3164_v4, %v1525_v5 }
0x165e   :  { %1532 = vrot.lane.b32.xlu1 %v1528_v6, %s3294_s20 }
0x165f   :  { %1534 = vrot.lane.b32.xlu0 %v1529_v7, %s3294_s20 }
0x16bf   :  { %v1511_v10 = vpop.permute.xlu1 %1510 }
0x16c0   :  { %v1513_v11 = vpop.permute.xlu0 %1512  ;;  %v1516_v12 = vmul.f32 %v3162_v1, %v1511_v10 }
0x16c1   :  { %v1517_v13 = vmul.f32 %v3164_v4, %v1513_v11 }
0x16d0   :  { %v1533_v14 = vpop.permute.xlu1 %1532 }
0x16d1   :  { %v1538_v17 = vadd.f32 %v1533_v14, %v1516_v12  ;;  %v1535_v18 = vpop.permute.xlu0 %1534 }
0x16d2   :  { %v1539_v19 = vadd.f32 %v1535_v18, %v1517_v13 }
0x16d3   :  { %3165 = vtanh.f32 %v1538_v17  ;;  %v1664_v22 = vrot.slane %v1538_v17, 1 }
0x16d4   :  { %3167 = vtanh.f32 %v1539_v19  ;;  %v1665_v32 = vrot.slane %v1539_v19, 1 }
0x16dd   :  { %v3166_v20 = vpop.eup %3165 }
0x16de   :  { %v3168_v21 = vpop.eup %3167  ;;  %1544 = vrot.lane.b32.xlu1 %v3166_v20, %s3292_s3 }
0x16df   :  { %1546 = vrot.lane.b32.xlu0 %v3168_v21, %s3292_s3 }
0x16e3   :  { %1666 = vrot.lane.b32.xlu0 %v1664_v22, %s3293_s4 }
0x1750   :  { %v1545_v24 = vpop.permute.xlu1 %1544 }
0x1751   :  { %v3668_v25 = vmul.f32 %v3162_v1, %v1545_v24  ;;  %v1547_v27 = vpop.permute.xlu0 %1546 }
0x1752   :  { %v1551_v28 = vmul.f32 %v3164_v4, %v1547_v27 }
0x1753   :  { %v1554_v57 = vrot.slane %v3668_v25, 6  ;;  %v2437_v13 = vrot.slane %v3668_v25, 5 }
0x1754   :  { %v1555_v29 = vrot.slane %v1551_v28, 5 }
0x1755   :  { %v1667_v54 = vpop.permute.xlu0 %1666  ;;  %v2466_v22 = vsel %vm2413_vm3, %v1410_v39, %v2437_v13 }
0x1756   :  { %v3673_v30 = vsel %vm2413_vm3, %v2434_v55, %v1555_v29  ;;  %v1556_v31 = vsel %vm263_vm2, %v1555_v29, %v1554_v57 }
0x1757   :  { %1557 = vrot.lane.b32.xlu1 %v1556_v31, %s3293_s4 }
0x175b   :  { %1668 = vrot.lane.b32.xlu1 %v1665_v32, %s3293_s4 }
0x17c9   :  { %v1558_v33 = vpop.permute.xlu1 %1557 }
0x17ca   :  { %2839 = vmatmul.mubr.msk.f32.vlgmr.msra.gmra.mrb[10].mxu1 %vm40_vm1, %v1558_v33 }
0x17cb   :  { %2978 = vmatpush3.bf16.msra.mxu1 %v3354_v9  ;;  %2860 = vmatprep.mubr.msk.f32.mxu1 %vm3290_vm0, %v3291_v8 }
0x17cc   :  { %2979 = vmatprep.subr.bf16.mxu1 %v3289_v3 }
0x17cd   :  { %v1669_v59 = vpop.permute.xlu1 %1668 }
0x17cf   :  { %2981 = vmatpush3.bf16.msra.mxu1 %v3370_v15 }
0x17d0   :  { %2988 = vmatprep.subr.bf16.mxu1 %v3289_v3 }
0x189d   :  { %v1627_v34 = vpop.f32.mrb[10].mxu1 }
0x189e   :  { %v1632_v35 = vrot.slane %v1627_v34, 3  ;;  %v1633_v36 = vrot.slane %v1627_v34, 4  ;;  %v2840_v38 = vpop.f32.mrb[11].mxu1 }
0x18a0   :  { %v1636_v40 = vadd.f32 %v1632_v35, %v3403_v26  ;;  %v1637_v41 = vadd.f32 %v1633_v36, %v3401_v23 }
0x18a2   :  { %3169 = vtanh.f32 %v1636_v40  ;;  %v2606_v42 = vmul.f32 -1.442695, %v1636_v40  ;;  %v2607_v43 = vmul.f32 -1.442695, %v1637_v41 }
0x18a3   :  { %3171 = vtanh.f32 %v1637_v41 }
0x18a4   :  { %3173 = vpow2.f32 %v2606_v42 }
0x18a5   :  { %3175 = vpow2.f32 %v2607_v43 }
0x18ac   :  { %v3170_v44 = vpop.eup %3169 }
0x18ad   :  { %v3172_v45 = vpop.eup %3171  ;;  %1654 = vrot.lane.b32.xlu0 %v3170_v44, %s3293_s4 }
0x18ae   :  { %v3174_v46 = vpop.eup %3173  ;;  %1656 = vrot.lane.b32.xlu1 %v3172_v45, %s3293_s4 }
0x18af   :  { %v3176_v48 = vpop.eup %3175  ;;  %v1646_v50 = vadd.f32 1.0, %v3174_v46 }
0x18b0   :  { %v1647_v51 = vadd.f32 1.0, %v3176_v48 }
0x18b1   :  { %3177 = vrcp.f32 %v1646_v50 }
0x18b2   :  { %3179 = vrcp.f32 %v1647_v51 }
0x18bb   :  { %v3178_v52 = vpop.eup %3177 }
0x18bc   :  { %v3180_v58 = vpop.eup %3179  ;;  %v1672_v61 = vmul.f32 %v3178_v52, %v1667_v54 }
0x18bd   :  { %v1673_v62 = vmul.f32 %v3180_v58, %v1669_v59 }
0x18be   :  { %1676 = vrot.lane.b32.xlu0 %v1672_v61, %s3294_s20 }
0x18bf   :  { %1678 = vrot.lane.b32.xlu1 %v1673_v62, %s3294_s20 }
0x191f   :  { %v1655_v63 = vpop.permute.xlu0 %1654 }
0x1920   :  { %v1657_v0 = vpop.permute.xlu1 %1656  ;;  %v1660_v1 = vmul.f32 %v3178_v52, %v1655_v63 }
0x1921   :  { %v1661_v2 = vmul.f32 %v3180_v58, %v1657_v0 }
0x1930   :  { %v1677_v4 = vpop.permute.xlu0 %1676 }
0x1931   :  { %v1679_v5 = vpop.permute.xlu1 %1678  ;;  %v1682_v6 = vadd.f32 %v1677_v4, %v1660_v1 }
0x1932   :  { %v1683_v7 = vadd.f32 %v1679_v5, %v1661_v2 }
0x1933   :  { %3181 = vtanh.f32 %v1682_v6  ;;  %v1808_v12 = vrot.slane %v1682_v6, 1 }
0x1934   :  { %3183 = vtanh.f32 %v1683_v7  ;;  %v1809_v55 = vrot.slane %v1683_v7, 1 }
0x193d   :  { %v3182_v10 = vpop.eup %3181 }
0x193e   :  { %v3184_v11 = vpop.eup %3183  ;;  %1688 = vrot.lane.b32.xlu0 %v3182_v10, %s3292_s3 }
0x193f   :  { %1690 = vrot.lane.b32.xlu1 %v3184_v11, %s3292_s3 }
0x1943   :  { %1810 = vrot.lane.b32.xlu1 %v1808_v12, %s3293_s4 }
0x19b0   :  { %v1689_v14 = vpop.permute.xlu0 %1688 }
0x19b1   :  { %v1691_v17 = vpop.permute.xlu1 %1690  ;;  %v1694_v18 = vmul.f32 %v3178_v52, %v1689_v14 }
0x19b2   :  { %v1695_v19 = vmul.f32 %v3180_v58, %v1691_v17 }
0x19b3   :  { %v1698_v20 = vrot.slane %v1694_v18, 5  ;;  %v2440_v21 = vrot.slane %v1694_v18, 3 }
0x19b4   :  { %v1699_v24 = vrot.slane %v1695_v19, 4  ;;  %v2441_v27 = vrot.slane %v1695_v19, 3 }
0x19b5   :  { %v3699_v28 = vsel %vm2416_vm4, %v2466_v22, %v2440_v21  ;;  %v1811_v45 = vpop.permute.xlu1 %1810 }
0x19b6   :  { %v3703_v57 = vsel %vm2416_vm4, %v3673_v30, %v2441_v27  ;;  %v1700_v25 = vsel %vm263_vm2, %v1699_v24, %v1698_v20 }
0x19b7   :  { %1701 = vrot.lane.b32.xlu0 %v1700_v25, %s3293_s4 }
0x19bb   :  { %1812 = vrot.lane.b32.xlu0 %v1809_v55, %s3293_s4 }
0x1a29   :  { %v1702_v29 = vpop.permute.xlu0 %1701 }
0x1a2a   :  { %2850 = vmatmul.mubr.msk.f32.vlgmr.msra.gmra.mrb[12].mxu0 %vm40_vm1, %v1702_v29 }
0x1a2b   :  { %2984 = vmatpush3.bf16.msra.mxu0 %v3354_v9  ;;  %2871 = vmatprep.mubr.msk.f32.mxu0 %vm3290_vm0, %v3291_v8 }
0x1a2c   :  { %2985 = vmatprep.subr.bf16.mxu0 %v3289_v3 }
0x1a2d   :  { %v1813_v48 = vpop.permute.xlu0 %1812 }
0x1a2f   :  { %2987 = vmatpush3.bf16.msra.mxu0 %v3370_v15 }
0x1a30   :  { %2994 = vmatprep.subr.bf16.mxu0 %v3289_v3 }
0x1afd   :  { %v1771_v37 = vpop.f32.mrb[12].mxu0 }
0x1afe   :  { %v1776_v39 = vrot.slane %v1771_v37, 4  ;;  %v1777_v30 = vrot.slane %v1771_v37, 5  ;;  %v2851_v31 = vpop.f32.mrb[13].mxu0 }
0x1b00   :  { %v1780_v32 = vadd.f32 %v1776_v39, %v3403_v26  ;;  %v1781_v33 = vadd.f32 %v1777_v30, %v3401_v23 }
0x1b02   :  { %3185 = vtanh.f32 %v1780_v32  ;;  %v2609_v34 = vmul.f32 -1.442695, %v1780_v32  ;;  %v2610_v35 = vmul.f32 -1.442695, %v1781_v33 }
0x1b03   :  { %3187 = vtanh.f32 %v1781_v33 }
0x1b04   :  { %3189 = vpow2.f32 %v2609_v34 }
0x1b05   :  { %3191 = vpow2.f32 %v2610_v35 }
0x1b0c   :  { %v3186_v36 = vpop.eup %3185 }
0x1b0d   :  { %v3188_v38 = vpop.eup %3187  ;;  %1798 = vrot.lane.b32.xlu1 %v3186_v36, %s3293_s4 }
0x1b0e   :  { %v3190_v40 = vpop.eup %3189  ;;  %1800 = vrot.lane.b32.xlu0 %v3188_v38, %s3293_s4 }
0x1b0f   :  { %v3192_v41 = vpop.eup %3191  ;;  %v1790_v42 = vadd.f32 1.0, %v3190_v40 }
0x1b10   :  { %v1791_v43 = vadd.f32 1.0, %v3192_v41 }
0x1b11   :  { %3193 = vrcp.f32 %v1790_v42 }
0x1b12   :  { %3195 = vrcp.f32 %v1791_v43 }
0x1b1b   :  { %v3194_v44 = vpop.eup %3193 }
0x1b1c   :  { %v3196_v46 = vpop.eup %3195  ;;  %v1816_v50 = vmul.f32 %v3194_v44, %v1811_v45 }
0x1b1d   :  { %v1817_v51 = vmul.f32 %v3196_v46, %v1813_v48 }
0x1b1e   :  { %1820 = vrot.lane.b32.xlu1 %v1816_v50, %s3294_s20 }
0x1b1f   :  { %1822 = vrot.lane.b32.xlu0 %v1817_v51, %s3294_s20 }
0x1b7f   :  { %v1799_v52 = vpop.permute.xlu1 %1798 }
0x1b80   :  { %v1801_v54 = vpop.permute.xlu0 %1800  ;;  %v1804_v58 = vmul.f32 %v3194_v44, %v1799_v52 }
0x1b81   :  { %v1805_v59 = vmul.f32 %v3196_v46, %v1801_v54 }
0x1b90   :  { %v1821_v61 = vpop.permute.xlu1 %1820 }
0x1b91   :  { %v1826_v62 = vadd.f32 %v1821_v61, %v1804_v58  ;;  %v1823_v63 = vpop.permute.xlu0 %1822 }
0x1b92   :  { %v1827_v0 = vadd.f32 %v1823_v63, %v1805_v59 }
0x1b93   :  { %3197 = vtanh.f32 %v1826_v62  ;;  %v1952_v4 = vrot.slane %v1826_v62, 1 }
0x1b94   :  { %3199 = vtanh.f32 %v1827_v0  ;;  %v1953_v20 = vrot.slane %v1827_v0, 1 }
0x1b9d   :  { %v3198_v1 = vpop.eup %3197 }
0x1b9e   :  { %v3200_v2 = vpop.eup %3199  ;;  %1832 = vrot.lane.b32.xlu1 %v3198_v1, %s3292_s3 }
0x1b9f   :  { %1834 = vrot.lane.b32.xlu0 %v3200_v2, %s3292_s3 }
0x1ba3   :  { %1954 = vrot.lane.b32.xlu0 %v1952_v4, %s3293_s4 }
0x1c10   :  { %v1833_v5 = vpop.permute.xlu1 %1832 }
0x1c11   :  { %v1838_v6 = vmul.f32 %v3194_v44, %v1833_v5  ;;  %v1835_v7 = vpop.permute.xlu0 %1834 }
0x1c12   :  { %v1839_v10 = vmul.f32 %v3196_v46, %v1835_v7 }
0x1c13   :  { %v1842_v11 = vrot.slane %v1838_v6, 4  ;;  %v2444_v12 = vrot.slane %v1838_v6, 1 }
0x1c14   :  { %v1843_v13 = vrot.slane %v1839_v10, 3  ;;  %v2445_v14 = vrot.slane %v1839_v10, 1 }
0x1c15   :  { %v3726_v17 = vsel %vm2419_vm5, %v3699_v28, %v2444_v12  ;;  %v1955_v35 = vpop.permute.xlu0 %1954 }
0x1c16   :  { %v3730_v18 = vsel %vm2419_vm5, %v3703_v57, %v2445_v14  ;;  %v1844_v19 = vsel %vm263_vm2, %v1843_v13, %v1842_v11 }
0x1c17   :  { %1845 = vrot.lane.b32.xlu1 %v1844_v19, %s3293_s4 }
0x1c1b   :  { %1956 = vrot.lane.b32.xlu1 %v1953_v20, %s3293_s4 }
0x1c89   :  { %v1846_v21 = vpop.permute.xlu1 %1845 }
0x1c8a   :  { %2861 = vmatmul.mubr.msk.f32.vlgmr.msra.gmra.mrb[12].mxu1 %vm40_vm1, %v1846_v21 }
0x1c8b   :  { %2990 = vmatpush3.bf16.msra.mxu1 %v3354_v9  ;;  %2882 = vmatprep.mubr.msk.f32.mxu1 %vm3290_vm0, %v3291_v8 }
0x1c8c   :  { %2991 = vmatprep.subr.bf16.mxu1 %v3289_v3 }
0x1c8d   :  { %v1957_v38 = vpop.permute.xlu1 %1956 }
0x1c8f   :  { %2993 = vmatpush3.bf16.msra.mxu1 %v3370_v15 }
0x1d5d   :  { %v1915_v22 = vpop.f32.mrb[12].mxu1 }
0x1d5e   :  { %v1920_v24 = vrot.slane %v1915_v22, 5  ;;  %v1921_v27 = vrot.slane %v1915_v22, 6  ;;  %v2862_v28 = vpop.f32.mrb[13].mxu1 }
0x1d60   :  { %v1924_v57 = vadd.f32 %v1920_v24, %v3403_v26  ;;  %v1925_v25 = vadd.f32 %v1921_v27, %v3401_v23 }
0x1d62   :  { %3201 = vtanh.f32 %v1924_v57  ;;  %v2612_v55 = vmul.f32 -1.442695, %v1924_v57  ;;  %v2613_v29 = vmul.f32 -1.442695, %v1925_v25 }
0x1d63   :  { %3203 = vtanh.f32 %v1925_v25 }
0x1d64   :  { %3205 = vpow2.f32 %v2612_v55 }
0x1d65   :  { %3207 = vpow2.f32 %v2613_v29 }
0x1d6c   :  { %v3202_v37 = vpop.eup %3201 }
0x1d6d   :  { %v3204_v39 = vpop.eup %3203  ;;  %1942 = vrot.lane.b32.xlu0 %v3202_v37, %s3293_s4 }
0x1d6e   :  { %v3206_v30 = vpop.eup %3205  ;;  %1944 = vrot.lane.b32.xlu1 %v3204_v39, %s3293_s4 }
0x1d6f   :  { %v3208_v31 = vpop.eup %3207  ;;  %v1934_v32 = vadd.f32 1.0, %v3206_v30 }
0x1d70   :  { %v1935_v33 = vadd.f32 1.0, %v3208_v31 }
0x1d71   :  { %3209 = vrcp.f32 %v1934_v32 }
0x1d72   :  { %3211 = vrcp.f32 %v1935_v33 }
0x1d7b   :  { %v3210_v34 = vpop.eup %3209 }
0x1d7c   :  { %v3212_v36 = vpop.eup %3211  ;;  %v1960_v40 = vmul.f32 %v3210_v34, %v1955_v35 }
0x1d7d   :  { %v1961_v41 = vmul.f32 %v3212_v36, %v1957_v38 }
0x1d7e   :  { %1964 = vrot.lane.b32.xlu0 %v1960_v40, %s3294_s20 }
0x1d7f   :  { %1966 = vrot.lane.b32.xlu1 %v1961_v41, %s3294_s20 }
0x1ddf   :  { %v1943_v42 = vpop.permute.xlu0 %1942 }
0x1de0   :  { %v1945_v43 = vpop.permute.xlu1 %1944  ;;  %v1948_v44 = vmul.f32 %v3210_v34, %v1943_v42 }
0x1de1   :  { %v1949_v45 = vmul.f32 %v3212_v36, %v1945_v43 }
0x1df0   :  { %v1965_v46 = vpop.permute.xlu0 %1964 }
0x1df1   :  { %v1967_v48 = vpop.permute.xlu1 %1966  ;;  %v1970_v50 = vadd.f32 %v1965_v46, %v1948_v44 }
0x1df2   :  { %v1971_v51 = vadd.f32 %v1967_v48, %v1949_v45 }
0x1df3   :  { %3213 = vtanh.f32 %v1970_v50  ;;  %v2096_v58 = vrot.slane %v1970_v50, 1 }
0x1df4   :  { %3215 = vtanh.f32 %v1971_v51  ;;  %v2097_v10 = vrot.slane %v1971_v51, 1 }
0x1dfd   :  { %v3214_v52 = vpop.eup %3213 }
0x1dfe   :  { %v3216_v54 = vpop.eup %3215  ;;  %1976 = vrot.lane.b32.xlu0 %v3214_v52, %s3292_s3 }
0x1dff   :  { %1978 = vrot.lane.b32.xlu1 %v3216_v54, %s3292_s3 }
0x1e03   :  { %2098 = vrot.lane.b32.xlu1 %v2096_v58, %s3293_s4 }
0x1e70   :  { %v1977_v59 = vpop.permute.xlu0 %1976 }
0x1e71   :  { %v1979_v61 = vpop.permute.xlu1 %1978  ;;  %v1982_v62 = vmul.f32 %v3210_v34, %v1977_v59 }
0x1e72   :  { %v1983_v63 = vmul.f32 %v3212_v36, %v1979_v61 }
0x1e73   :  { %v1986_v0 = vrot.slane %v1982_v62, 3  ;;  %v2448_v1 = vrot.slane %v1982_v62, 7 }
0x1e74   :  { %v1987_v2 = vrot.slane %v1983_v63, 2  ;;  %v2449_v4 = vrot.slane %v1983_v63, 7 }
0x1e75   :  { %v3752_v5 = vsel %vm2422_vm6, %v3726_v17, %v2448_v1  ;;  %v2099_v28 = vpop.permute.xlu1 %2098 }
0x1e76   :  { %v3756_v6 = vsel %vm2422_vm6, %v3730_v18, %v2449_v4  ;;  %v1988_v7 = vsel %vm263_vm2, %v1987_v2, %v1986_v0 }
0x1e77   :  { %1989 = vrot.lane.b32.xlu0 %v1988_v7, %s3293_s4 }
0x1e7b   :  { %2100 = vrot.lane.b32.xlu0 %v2097_v10, %s3293_s4 }
0x1ee9   :  { %v1990_v11 = vpop.permute.xlu0 %1989 }
0x1eea   :  { %2872 = vmatmul.mubr.msk.f32.vlgmr.msra.gmra.mrb[14].mxu0 %vm40_vm1, %v1990_v11 }
0x1eeb   :  { %2996 = vmatpush3.bf16.msra.mxu0 %v3354_v9  ;;  %2893 = vmatprep.mubr.msk.f32.mxu0 %vm3290_vm0, %v3291_v8 }
0x1eec   :  { %2997 = vmatprep.subr.bf16.mxu0 %v3289_v3 }
0x1eed   :  { %v2101_v25 = vpop.permute.xlu0 %2100 }
0x1eef   :  { %2999 = vmatpush3.bf16.msra.mxu0 %v3370_v15 }
0x1fbd   :  { %v2059_v12 = vpop.f32.mrb[14].mxu0 }
0x1fbe   :  { %v2064_v13 = vrot.slane %v2059_v12, 6  ;;  %v2065_v14 = vrot.slane %v2059_v12, 7  ;;  %v2873_v17 = vpop.f32.mrb[15].mxu0 }
0x1fc0   :  { %v2068_v18 = vadd.f32 %v2064_v13, %v3403_v26  ;;  %v2069_v19 = vadd.f32 %v2065_v14, %v3401_v23 }
0x1fc2   :  { %3217 = vtanh.f32 %v2068_v18  ;;  %v2615_v20 = vmul.f32 -1.442695, %v2068_v18  ;;  %v2616_v21 = vmul.f32 -1.442695, %v2069_v19 }
0x1fc3   :  { %3219 = vtanh.f32 %v2069_v19 }
0x1fc4   :  { %3221 = vpow2.f32 %v2615_v20 }
0x1fc5   :  { %3223 = vpow2.f32 %v2616_v21 }
0x1fcc   :  { %v3218_v9 = vpop.eup %3217 }
0x1fcd   :  { %v3220_v8 = vpop.eup %3219  ;;  %2086 = vrot.lane.b32.xlu1 %v3218_v9, %s3293_s4 }
0x1fce   :  { %v3222_v3 = vpop.eup %3221  ;;  %2088 = vrot.lane.b32.xlu0 %v3220_v8, %s3293_s4 }
0x1fcf   :  { %v3224_v15 = vpop.eup %3223  ;;  %v2078_v22 = vadd.f32 1.0, %v3222_v3 }
0x1fd0   :  { %v2079_v24 = vadd.f32 1.0, %v3224_v15 }
0x1fd1   :  { %3225 = vrcp.f32 %v2078_v22 }
0x1fd2   :  { %3227 = vrcp.f32 %v2079_v24 }
0x1fdb   :  { %v3226_v27 = vpop.eup %3225 }
0x1fdc   :  { %v3228_v57 = vpop.eup %3227  ;;  %v2104_v55 = vmul.f32 %v3226_v27, %v2099_v28 }
0x1fdd   :  { %v2105_v29 = vmul.f32 %v3228_v57, %v2101_v25 }
0x1fde   :  { %2108 = vrot.lane.b32.xlu1 %v2104_v55, %s3294_s20 }
0x1fdf   :  { %2110 = vrot.lane.b32.xlu0 %v2105_v29, %s3294_s20 }
0x203f   :  { %v2087_v37 = vpop.permute.xlu1 %2086 }
0x2040   :  { %v2089_v39 = vpop.permute.xlu0 %2088  ;;  %v2092_v30 = vmul.f32 %v3226_v27, %v2087_v37 }
0x2041   :  { %v2093_v31 = vmul.f32 %v3228_v57, %v2089_v39 }
0x2050   :  { %v2109_v32 = vpop.permute.xlu1 %2108 }
0x2051   :  { %v2114_v33 = vadd.f32 %v2109_v32, %v2092_v30  ;;  %v2111_v34 = vpop.permute.xlu0 %2110 }
0x2052   :  { %v2115_v35 = vadd.f32 %v2111_v34, %v2093_v31 }
0x2053   :  { %3229 = vtanh.f32 %v2114_v33  ;;  %v2239_v40 = vrot.slane %v2114_v33, 1 }
0x2054   :  { %3231 = vtanh.f32 %v2115_v35  ;;  %v2240_v58 = vrot.slane %v2115_v35, 1 }
0x205d   :  { %v3230_v36 = vpop.eup %3229 }
0x205e   :  { %v3232_v38 = vpop.eup %3231  ;;  %2120 = vrot.lane.b32.xlu1 %v3230_v36, %s3292_s3 }
0x205f   :  { %2122 = vrot.lane.b32.xlu0 %v3232_v38, %s3292_s3 }
0x2063   :  { %2241 = vrot.lane.b32.xlu0 %v2239_v40, %s3293_s4 }
0x20d0   :  { %v2121_v41 = vpop.permute.xlu1 %2120 }
0x20d1   :  { %v2126_v42 = vmul.f32 %v3226_v27, %v2121_v41  ;;  %v2123_v43 = vpop.permute.xlu0 %2122 }
0x20d2   :  { %v2127_v44 = vmul.f32 %v3228_v57, %v2123_v43 }
0x20d3   :  { %v2130_v45 = vrot.slane %v2126_v42, 2  ;;  %v2452_v46 = vrot.slane %v2126_v42, 5 }
0x20d4   :  { %v2131_v48 = vrot.slane %v2127_v44, 1  ;;  %v2453_v50 = vrot.slane %v2127_v44, 5 }
0x20d5   :  { %v3778_v51 = vsel %vm2425_vm7, %v3752_v5, %v2452_v46  ;;  %v2242_v18 = vpop.permute.xlu0 %2241 }
0x20d6   :  { %v2475_v52 = vsel %vm2425_vm7, %v3756_v6, %v2453_v50  ;;  %v2132_v54 = vsel %vm263_vm2, %v2131_v48, %v2130_v45 }
0x20d7   :  { %2133 = vrot.lane.b32.xlu1 %v2132_v54, %s3293_s4 }
0x20db   :  { %2243 = vrot.lane.b32.xlu1 %v2240_v58, %s3293_s4 }
0x2149   :  { %v2134_v59 = vpop.permute.xlu1 %2133 }
0x214a   :  { %2883 = vmatmul.mubr.msk.f32.vlgmr.msra.gmra.mrb[14].mxu1 %vm40_vm1, %v2134_v59 }
0x214d   :  { %v2244_v14 = vpop.permute.xlu1 %2243 }
0x221d   :  { %v2203_v61 = vpop.f32.mrb[14].mxu1 }
0x221e   :  { %v2208_v62 = vrot.slane %v2203_v61, 7  ;;  %v2212_v63 = vadd.f32 %v2203_v61, %v3401_v23  ;;  %v2884_v0 = vpop.f32.mrb[15].mxu1 }
0x2220   :  { %v2211_v1 = vadd.f32 %v2208_v62, %v3403_v26  ;;  %3233 = vtanh.f32 %v2212_v63  ;;  %v2619_v2 = vmul.f32 -1.442695, %v2212_v63 }
0x2222   :  { %3235 = vtanh.f32 %v2211_v1  ;;  %v2618_v4 = vmul.f32 -1.442695, %v2211_v1 }
0x2223   :  { %3237 = vpow2.f32 %v2619_v2 }
0x2224   :  { %3239 = vpow2.f32 %v2618_v4 }
0x222a   :  { %v3234_v5 = vpop.eup %3233 }
0x222b   :  { %2231 = vrot.lane.b32.xlu1 %v3234_v5, %s3293_s4 }
0x222c   :  { %v3236_v6 = vpop.eup %3235 }
0x222d   :  { %v3238_v7 = vpop.eup %3237  ;;  %2229 = vrot.lane.b32.xlu0 %v3236_v6, %s3293_s4 }
0x222e   :  { %v3240_v10 = vpop.eup %3239  ;;  %v2222_v11 = vadd.f32 1.0, %v3238_v7 }
0x222f   :  { %v2221_v12 = vadd.f32 1.0, %v3240_v10 }
0x2230   :  { %3241 = vrcp.f32 %v2222_v11 }
0x2231   :  { %3243 = vrcp.f32 %v2221_v12 }
0x223a   :  { %v3242_v13 = vpop.eup %3241 }
0x223b   :  { %v3244_v17 = vpop.eup %3243  ;;  %v2248_v19 = vmul.f32 %v3242_v13, %v2244_v14 }
0x223c   :  { %v2247_v20 = vmul.f32 %v3244_v17, %v2242_v18  ;;  %v2513_v18 = vrot.slane %v3612_v56, 7 }
0x223d   :  { %2253 = vrot.lane.b32.xlu1 %v2248_v19, %s3294_s20 }
0x223e   :  { %2251 = vrot.lane.b32.xlu0 %v2247_v20, %s3294_s20 }
0x229d   :  { %v2232_v21 = vpop.permute.xlu1 %2231 }
0x229e   :  { %v2236_v8 = vmul.f32 %v3242_v13, %v2232_v21 }
0x229f   :  { %v2230_v9 = vpop.permute.xlu0 %2229 }
0x22a0   :  { %v2235_v3 = vmul.f32 %v3244_v17, %v2230_v9 }
0x22af   :  { %v2254_v15 = vpop.permute.xlu1 %2253 }
0x22b0   :  { %v2258_v22 = vadd.f32 %v2254_v15, %v2236_v8  ;;  %v2252_v24 = vpop.permute.xlu0 %2251 }
0x22b1   :  { %v2257_v27 = vadd.f32 %v2252_v24, %v2235_v3 }
0x22b2   :  { %3245 = vtanh.f32 %v2258_v22  ;;  %v2382_v36 = vrot.slane %v2258_v22, 1 }
0x22b3   :  { %3247 = vtanh.f32 %v2257_v27  ;;  %v2381_v25 = vrot.slane %v2257_v27, 1 }
0x22bc   :  { %v3246_v28 = vpop.eup %3245 }
0x22bd   :  { %v3248_v57 = vpop.eup %3247  ;;  %2265 = vrot.lane.b32.xlu1 %v3246_v28, %s3292_s3 }
0x22be   :  { %2263 = vrot.lane.b32.xlu0 %v3248_v57, %s3292_s3 }
0x22c1   :  { %2383 = vrot.lane.b32.xlu1 %v2381_v25, %s3293_s4 }
0x232f   :  { %v2266_v55 = vpop.permute.xlu1 %2265 }
0x2330   :  { %v2270_v29 = vmul.f32 %v3242_v13, %v2266_v55  ;;  %v2264_v37 = vpop.permute.xlu0 %2263 }
0x2331   :  { %v2269_v39 = vmul.f32 %v3244_v17, %v2264_v37  ;;  %v2432_v17 = vsel %vm2431_vm9, %v3578_v16, %v3610_v53 }
0x2332   :  { %v2457_v30 = vrot.slane %v2270_v29, 3 }
0x2333   :  { %v2273_v31 = vrot.slane %v2269_v39, 1  ;;  %v2456_v32 = vrot.slane %v2269_v39, 3 }
0x2334   :  { %v3796_v33 = vsel %vm2428_vm8, %v2475_v52, %v2457_v30 }
0x2335   :  { %v2274_v34 = vsel %vm263_vm2, %v2270_v29, %v2273_v31  ;;  %v3801_v35 = vsel %vm2428_vm8, %v3778_v51, %v2456_v32 }
0x2336   :  { %2275 = vrot.lane.b32.xlu0 %v2274_v34, %s3293_s4 }
0x233a   :  { %2385 = vrot.lane.b32.xlu0 %v2382_v36, %s3293_s4 }
0x23a8   :  { %v2276_v38 = vpop.permute.xlu0 %2275 }
0x23a9   :  { %2894 = vmatmul.mubr.msk.f32.vlgmr.msra.gmra.mrb[16].mxu0 %vm40_vm1, %v2276_v38 }
0x23ac   :  { %v2386_v61 = vpop.permute.xlu0 %2385 }
0x247c   :  { %v2345_v40 = vpop.f32.mrb[16].mxu0 }
0x247d   :  { %v2350_v41 = vrot.slane %v2345_v40, 1  ;;  %v2353_v42 = vadd.f32 %v2345_v40, %v3403_v26  ;;  %v2895_v43 = vpop.f32.mrb[17].mxu0 }
0x247f   :  { %v2354_v44 = vadd.f32 %v2350_v41, %v3401_v23  ;;  %3249 = vtanh.f32 %v2353_v42  ;;  %v2621_v45 = vmul.f32 -1.442695, %v2353_v42  ;;  %v2384_v23 = vpop.permute.xlu1 %2383 }
0x2481   :  { %3251 = vtanh.f32 %v2354_v44  ;;  %v2622_v46 = vmul.f32 -1.442695, %v2354_v44 }
0x2482   :  { %3253 = vpow2.f32 %v2621_v45 }
0x2483   :  { %3255 = vpow2.f32 %v2622_v46 }
0x2489   :  { %v3250_v48 = vpop.eup %3249 }
0x248a   :  { %2371 = vrot.lane.b32.xlu1 %v3250_v48, %s3293_s4 }
0x248b   :  { %v3252_v50 = vpop.eup %3251 }
0x248c   :  { %v3254_v51 = vpop.eup %3253  ;;  %2373 = vrot.lane.b32.xlu0 %v3252_v50, %s3293_s4 }
0x248d   :  { %v3256_v52 = vpop.eup %3255  ;;  %v2363_v54 = vadd.f32 1.0, %v3254_v51 }
0x248e   :  { %v2364_v58 = vadd.f32 1.0, %v3256_v52 }
0x248f   :  { %3257 = vrcp.f32 %v2363_v54 }
0x2490   :  { %3259 = vrcp.f32 %v2364_v58 }
0x2499   :  { %v3258_v26 = vpop.eup %3257 }
0x249a   :  { %v3260_v59 = vpop.eup %3259  ;;  %v2389_v62 = vmul.f32 %v3258_v26, %v2384_v23 }
0x249b   :  { %v2390_v63 = vmul.f32 %v3260_v59, %v2386_v61 }
0x249c   :  { %2393 = vrot.lane.b32.xlu1 %v2389_v62, %s3294_s20 }
0x249d   :  { %2395 = vrot.lane.b32.xlu0 %v2390_v63, %s3294_s20 }
0x24fc   :  { %v2372_v0 = vpop.permute.xlu1 %2371 }
0x24fd   :  { %v2377_v2 = vmul.f32 %v3258_v26, %v2372_v0 }
0x24fe   :  { %v2374_v1 = vpop.permute.xlu0 %2373 }
0x24ff   :  { %v2378_v4 = vmul.f32 %v3260_v59, %v2374_v1 }
0x250e   :  { %v2394_v5 = vpop.permute.xlu1 %2393 }
0x250f   :  { %v2399_v6 = vadd.f32 %v2394_v5, %v2377_v2  ;;  %v2396_v7 = vpop.permute.xlu0 %2395 }
0x2510   :  { %v2400_v10 = vadd.f32 %v2396_v7, %v2378_v4 }
0x2511   :  { %3261 = vtanh.f32 %v2399_v6  ;;  %v2507_v14 = vrot.slane %v2399_v6, 1 }
0x2512   :  { %3263 = vtanh.f32 %v2400_v10  ;;  %v2508_v13 = vrot.slane %v2400_v10, 1 }
0x251b   :  { %v3262_v11 = vpop.eup %3261 }
0x251c   :  { %v3264_v12 = vpop.eup %3263  ;;  %2405 = vrot.lane.b32.xlu1 %v3262_v11, %s3292_s3 }
0x251d   :  { %2407 = vrot.lane.b32.xlu0 %v3264_v12, %s3292_s3 }
0x2520   :  { %2503 = vrot.lane.b32.xlu1 %v3602_v49, %s3292_s3 }
0x2521   :  { %2511 = vrot.lane.b32.xlu0 %v2508_v13, %s3292_s3 }
0x2524   :  { %2501 = vrot.lane.b32.xlu1 %v3600_v47, %s3292_s3 }
0x2525   :  { %2509 = vrot.lane.b32.xlu0 %v2507_v14, %s3292_s3 }
0x2528   :  { %2482 = vrot.lane.b32.xlu1 %v2432_v17, %s3293_s4 }
0x2529   :  { %2484 = vrot.lane.b32.xlu0 %v3619_v60, %s3293_s4 }
0x252c   :  { %2517 = vrot.lane.b32.xlu1 %v3610_v53, %s3293_s4 }
0x252d   :  { %2519 = vrot.lane.b32.xlu0 %v2513_v18, %s3293_s4 }
0x258e   :  { %v2406_v49 = vpop.permute.xlu1 %2405 }
0x258f   :  { %v2408_v47 = vpop.permute.xlu0 %2407  ;;  %v2411_v16 = vmul.f32 %v3258_v26, %v2406_v49 }
0x2590   :  { %v2412_v19 = vmul.f32 %v3260_v59, %v2408_v47 }
0x2591   :  { %v2462_v53 = vrot.slane %v2411_v16, 1 }
0x2592   :  { %v2504_v20 = vpop.permute.xlu1 %2503  ;;  %v2463_v8 = vrot.slane %v2412_v19, 1 }
0x2593   :  { %v2514_v21 = vrot.slane %v2504_v20, 7  ;;  %v2512_v9 = vpop.permute.xlu0 %2511  ;;  %v2478_v28 = vsel %vm2431_vm9, %v3801_v35, %v2462_v53 }
0x2594   :  { %v2479_v56 = vsel %vm2431_vm9, %v3796_v33, %v2463_v8  ;;  %v2515_v22 = vrot.slane %v2463_v8, 7  ;;  %v2516_v57 = vrot.slane %v2512_v9, 7 }
0x2595   :  { %2523 = vrot.lane.b32.xlu0 %v2514_v21, %s3293_s4 }
0x2596   :  { %v2502_v3 = vpop.permute.xlu1 %2501 }
0x2597   :  { %2521 = vrot.lane.b32.xlu1 %v2502_v3, %s3293_s4  ;;  %v2510_v60 = vpop.permute.xlu0 %2509 }
0x2599   :  { %2492 = vrot.lane.b32.xlu0 %v2479_v56, %s3292_s3 }
0x259a   :  { %v2483_v15 = vpop.permute.xlu1 %2482 }
0x259b   :  { %2525 = vrot.lane.b32.xlu1 %v2462_v53, %s3293_s4  ;;  %v2485_v24 = vpop.permute.xlu0 %2484 }
0x259d   :  { %2527 = vrot.lane.b32.xlu0 %v2515_v22, %s3293_s4 }
0x259e   :  { %v2518_v27 = vpop.permute.xlu1 %2517 }
0x259f   :  { %2542 = vst.msk [vmem:[%s3894_s6 - $0x7] sm:$0x80] %vm2541_vm10, %v2518_v27  ;;  %2490 = vrot.lane.b32.xlu1 %v2478_v28, %s3292_s3  ;;  %v2520_v25 = vpop.permute.xlu0 %2519 }
0x25a0   :  { %2544 = vst.msk [vmem:[%s3894_s6 + $0x1] sm:$0x1] %vm2543_vm11, %v2520_v25 }
0x25a1   :  { %2531 = vrot.lane.b32.xlu0 %v2516_v57, %s3293_s4 }
0x25a3   :  { %2529 = vrot.lane.b32.xlu1 %v2510_v60, %s3293_s4 }
0x2607   :  { %v2524_v55 = vpop.permute.xlu0 %2523 }
0x2608   :  { %2546 = vst.msk [vmem:[%s3894_s6 + $0x3] sm:$0x1] %vm2543_vm11, %v2524_v55 }
0x2609   :  { %v2522_v29 = vpop.permute.xlu1 %2521 }
0x260a   :  { %2545 = vst.msk [vmem:[%s3894_s6 - $0x5] sm:$0x80] %vm2541_vm10, %v2522_v29 }
0x260b   :  { %v2493_v37 = vpop.permute.xlu0 %2492 }
0x260c   :  { %v2497_v39 = vsel %vm40_vm1, %v2485_v24, %v2493_v37 }
0x260d   :  { %2500 = vst.msk [vmem:[#allocation2 + $0x8] sm:$0xff] %vm2498_vm12, %v2497_v39  ;;  %v2526_v30 = vpop.permute.xlu1 %2525 }
0x260e   :  { %2547 = vst.msk [vmem:[%s3894_s6 - $0x3] sm:$0x80] %vm2541_vm10, %v2526_v30 }
0x260f   :  { %v2528_v31 = vpop.permute.xlu0 %2527 }
0x2610   :  { %2548 = vst.msk [vmem:[%s3894_s6 + $0x5] sm:$0x1] %vm2543_vm11, %v2528_v31 }
0x2611   :  { %v2491_v32 = vpop.permute.xlu1 %2490 }
0x2612   :  { %v2496_v33 = vsel %vm40_vm1, %v2483_v15, %v2491_v32 }
0x2613   :  { %2499 = vst.msk [vmem:[#allocation2] sm:$0xff] %vm2498_vm12, %v2496_v33  ;;  %v2532_v34 = vpop.permute.xlu0 %2531 }
0x2614   :  { %2550 = vst.msk [vmem:[%s3894_s6 + $0x7] sm:$0x1] %vm2543_vm11, %v2532_v34 }
0x2615   :  { %3276 = shalt.err (!%p3273_p4)
}
0x2616   :  { %s3277_s15 = scalar_lea.hbm %s3893_s5, 256 }
0x2617   :  { %p3278_p5 = scmp.ne.s32.totalorder %s3893_s5, %s3277_s15  ;;  %p3281_p6 = scmp.lt.u32.totalorder %s3277_s15, %s3893_s5 }
0x2619   :  { %p3283_p7 = pnand %p3281_p6, %p3278_p5 }
0x261b   :  { %3286 = shalt.err (!%p3283_p7)
}
0x261c   :  { %s3296_s19 = smov 128   ;;  %s3297_s0 = smov 8   ;;  %v2530_v35 = vpop.permute.xlu1 %2529 }
0x261d   :  { %2562 = dma.vmem_to_hbm [thread:$0]  %s2557_s30, 256, %s3893_s5, [#allocation3], %s3296_s19, %s3296_s19, %s3297_s0  }
0x261e   :  { %2549 = vst.msk [vmem:[%s3894_s6 - $0x1] sm:$0x80] %vm2541_vm10, %v2530_v35 }
0x261f   :  { %3287 = dma.done.wait [#allocation3], 256  }
0x2620   :  { %3288 = vsyncadd [#allocation3], 4294967040 }
0x2621   :  { %2570 = vsyncpa [#allocation3], 1 }

</bundles_post_ra>
